<compile_context>
chip_gen: v7x
topology: tpu7x:2x2x1
jax: 0.10.0
libtpu: 0.0.40
codegen_flags: <defaults>
</compile_context>

<pallas_src>
import functools

import jax
import jax.numpy as jnp
import numpy as np
from jax import lax
from jax.experimental import pallas as pl
from jax.experimental.pallas import tpu as pltpu

_EPS = 1e-12  # F.normalize eps (applied to the norm => eps^2 on the squared norm)


# --------------------------------------------------------------------------- #
# In-kernel math helpers
# --------------------------------------------------------------------------- #
def _inv_norm(sumsq):
    # 1 / max(sqrt(sumsq), eps) == rsqrt(max(sumsq, eps^2))  (EUP rsqrt, no divide)
    return lax.rsqrt(jnp.maximum(sumsq, _EPS * _EPS))


def _l2n_last(x):
    return x * _inv_norm(jnp.sum(x * x, axis=-1, keepdims=True))


def _l2n_axis(x, axis):
    return x * _inv_norm(jnp.sum(x * x, axis=axis, keepdims=True))


def _score(q, proto, scale):
    """q: [n, c], proto: [way, c]; cosine scores scaled by scale_cls."""
    q = _l2n_last(q)
    proto = _l2n_last(proto)
    s = lax.dot_general(q, proto, (((1,), (1,)), ((), ())),
                        preferred_element_type=jnp.float32)  # [n, way]
    return scale * s


def _pixel_norm_pool(pool_ref, sum_ref, scale, sel_pix, sel_chan, phw, cb):
    """Per-pixel channel L2-normalize + spatial mean, on lane-dense data.

    sum_ref: [n, c*phw] accumulated sum, channel-major flatten of (c, phw).
    Writes pool_ref[n, c] = mean over the phw pixels of the per-pixel
    channel-normalized mean (sum_ref * scale).  The grouped reductions over the
    flattened minor dim are expressed as matmuls against small 0/1 selectors
    (no in-kernel minor-dim reshape needed):
        sel_pix[j, p]  = 1 iff (j mod phw) == p     [cb*phw, phw]
        sel_chan[j, i] = 1 iff (j div phw) == i     [cb*phw, cb]
    """
    n, K = sum_ref.shape
    c = K // phw
    nblk = c // cb
    W = cb * phw

    # pass 1: per-pixel sum-of-squares over channels -> [n, phw]
    nrm2 = jnp.zeros((n, phw), jnp.float32)
    for b in range(nblk):
        mb = sum_ref[:, b * W:(b + 1) * W].astype(jnp.float32) * scale
        nrm2 = nrm2 + jnp.dot(mb * mb, sel_pix, preferred_element_type=jnp.float32)
    inv = _inv_norm(nrm2)                                        # [n, phw]
    # broadcast 1/norm back to the flattened (channel, pixel) lane layout
    invk = lax.dot_general(inv, sel_pix, (((1,), (1,)), ((), ())),
                           preferred_element_type=jnp.float32)   # [n, cb*phw]

    # pass 2: normalize and average over pixels, one channel block at a time
    for b in range(nblk):
        mb = sum_ref[:, b * W:(b + 1) * W].astype(jnp.float32) * scale
        pool_ref[:, b * cb:(b + 1) * cb] = (
            jnp.dot(mb * invk, sel_chan, preferred_element_type=jnp.float32)
            * (1.0 / phw))


# --------------------------------------------------------------------------- #
# Kernels
# --------------------------------------------------------------------------- #
def _patch_kernel(scale_ref, selp_ref, selc_ref, *refs,
                  lambd, use_feat, shot, crop, phw, cb, cc, K):
    """Grid = (B, nq_tiles, crop_steps). crop axis is 'arbitrary' & accumulated."""
    if use_feat:
        (fq_ref, fp_ref, pq_ref, ps_ref, out_ref,
         qsum_ref, psum_ref, qpool_ref, ppool_ref) = refs
    else:
        (pq_ref, ps_ref, out_ref,
         qsum_ref, psum_ref, qpool_ref, ppool_ref) = refs
        fq_ref = fp_ref = None

    t = pl.program_id(2)

    @pl.when(t == 0)
    def _init():
        qsum_ref[...] = jnp.zeros_like(qsum_ref)
        psum_ref[...] = jnp.zeros_like(psum_ref)

    # ---- hot streaming accumulate: lane-dense minor dim (cc crops per step) --
    qacc = pq_ref[:, 0:K].astype(jnp.float32)                    # [nqt, K]
    for j in range(1, cc):
        qacc = qacc + pq_ref[:, j * K:(j + 1) * K].astype(jnp.float32)
    qsum_ref[...] += qacc

    sacc = ps_ref[:, :, 0:K].astype(jnp.float32)                 # [shot, way, K]
    for j in range(1, cc):
        sacc = sacc + ps_ref[:, :, j * K:(j + 1) * K].astype(jnp.float32)
    psum_ref[...] += jnp.sum(sacc, axis=0)                       # [way, K]

    @pl.when(t == pl.num_programs(2) - 1)
    def _finalize():
        selp = selp_ref[...]
        selc = selc_ref[...]
        _pixel_norm_pool(qpool_ref, qsum_ref, 1.0 / crop, selp, selc, phw, cb)
        _pixel_norm_pool(ppool_ref, psum_ref, 1.0 / (shot * crop), selp, selc, phw, cb)
        pq_pool = qpool_ref[...]                                 # [nqt, c]
        pc_pool = _l2n_last(ppool_ref[...])                      # cosine-normalized [way, c]
        if use_feat:
            q = lambd * fq_ref[...] + (1.0 - lambd) * pq_pool
            proto = lambd * fp_ref[...] + (1.0 - lambd) * pc_pool
        else:  # lambd == 0: feature branch contributes exactly nothing
            q = pq_pool
            proto = pc_pool
        out_ref[...] = _score(q, proto, scale_ref[0]).astype(out_ref.dtype)


def _feat_pool_kernel(fte_ref, ftr_ref, qpool_ref, proto_ref):
    """Whole-image feature branch pre-pool (only when lambd > 0). Grid=(B, qtf)."""
    @pl.when(pl.program_id(1) == 0)
    def _support():
        ftr = ftr_ref[...].astype(jnp.float32)        # [shot, way, c, hw]
        ftr = _l2n_axis(ftr, axis=-2)                 # per-pixel channel normalize
        ftr = jnp.mean(ftr, axis=-1)                  # adaptive_avg_pool2d -> [shot, way, c]
        ftr = _l2n_last(ftr)                          # cosine normalize
        proto_ref[...] = jnp.mean(ftr, axis=0)        # mean over shot -> [way, c]

    fte = fte_ref[...].astype(jnp.float32)            # [nqt, c, hw]
    fte = _l2n_axis(fte, axis=-2)
    qpool_ref[...] = jnp.mean(fte, axis=-1)           # -> [nqt, c]


def _feat_score_kernel(scale_ref, q_ref, p_ref, out_ref):
    """lambd == 1: the patch branch contributes exactly nothing."""
    out_ref[...] = _score(q_ref[...], p_ref[...], scale_ref[0]).astype(out_ref.dtype)


# --------------------------------------------------------------------------- #
# Wrapper helpers
# --------------------------------------------------------------------------- #
def _pad_to(x, m):
    return ((x + m - 1) // m) * m


def _blk_bytes(shape, dtype):
    """(8,128)-padded VMEM footprint of a block/scratch."""
    s = list(shape)
    if len(s) >= 1:
        s[-1] = _pad_to(s[-1], 128)
    if len(s) >= 2:
        s[-2] = _pad_to(s[-2], 8)
    return int(np.prod(s)) * jnp.dtype(dtype).itemsize


def _divisors(n):
    return [d for d in range(1, n + 1) if n % d == 0]


def _vmem_capacity_bytes():
    # Generation-aware clamp (v7x has 64 MiB / TensorCore); conservative fallback.
    try:
        cap = int(getattr(pltpu.get_tpu_info(), "vmem_capacity_bytes", 0))
        if cap > 0:
            return cap
    except Exception:
        pass
    return 64 << 20


def _pick_channel_block(c, phw, override=None):
    if override is not None:
        assert c % int(override) == 0, "channel_block must divide c"
        return int(override)
    f32 = jnp.float32
    for d in sorted(_divisors(c), reverse=True):
        sel = _blk_bytes((d * phw, phw), f32) + _blk_bytes((d * phw, d), f32)
        if sel <= (8 << 20):
            return d
    return 1


def _patch_vmem_needed(nqt, cc, K, c, phw, cb, way, shot, in_dtype, use_feat):
    f32 = jnp.float32
    need = 0
    need += 2 * _blk_bytes((nqt, cc * K), in_dtype)              # streamed query (dbl-buffered)
    need += 2 * _blk_bytes((shot, way, cc * K), in_dtype)        # streamed support
    need += _blk_bytes((nqt, K), f32) + _blk_bytes((way, K), f32)        # crop/shot sums
    need += _blk_bytes((nqt, c), f32) + _blk_bytes((way, c), f32)        # pooled scratch
    need += _blk_bytes((cb * phw, phw), f32) + _blk_bytes((cb * phw, cb), f32)  # selectors (single)
    if use_feat:
        need += 2 * _blk_bytes((nqt, c), f32) + _blk_bytes((way, c), f32)
    need += 2 * _blk_bytes((nqt, way), f32)                      # output block
    # finalize temporaries (slices, invk, ...) -- generous margin
    need += 2 * _blk_bytes((nqt, K), f32) + 3 * _blk_bytes((nqt, cb * phw), f32)
    need += 2 << 20
    return need


def _choose_patch_tiling(nq, crop, K, c, phw, cb, way, shot, in_dtype, use_feat,
                         budget, nq_tiles=None, crop_chunk=None):
    lane_ok = (K % 128 == 0)
    if nq_tiles is not None:
        nq_tiles = int(nq_tiles)
        assert nq % nq_tiles == 0, "nq_tiles must divide num_query"
        assert (nq // nq_tiles) % 8 == 0 or nq_tiles == 1, \
            "nq/nq_tiles must be a multiple of 8 (sublane tiling)"
        qt_opts = [nq_tiles]
    else:
        qt_opts = [d for d in _divisors(nq) if (nq // d) % 8 == 0 or d == 1]
    if crop_chunk is not None:
        crop_chunk = int(crop_chunk)
        assert crop % crop_chunk == 0, "crop_chunk must divide cropNum"
        assert crop_chunk == crop or (crop_chunk * K) % 128 == 0, \
            "crop_chunk*(c*ph*pw) must be a multiple of 128 (or equal cropNum)"
        cc_opts = [crop_chunk]
    else:
        cc_opts = [d for d in _divisors(crop) if d == crop or lane_ok]

    supp_bytes = shot * way * crop * K * jnp.dtype(in_dtype).itemsize
    best = None
    for qt in qt_opts:
        for cc in cc_opts:
            nqt = nq // qt
            need = _patch_vmem_needed(nqt, cc, K, c, phw, cb, way, shot, in_dtype, use_feat)
            # support gets re-streamed per query tile only when the crop axis
            # spans several grid steps
            reread = (qt - 1) * supp_bytes if cc < crop else 0
            key = (need > budget, reread, -cc, abs(qt - 2), qt, need)
            if best is None or key < best[0]:
                best = (key, qt, cc, need)
    return best[1], best[2], best[3]


# --------------------------------------------------------------------------- #
# Public wrapper
# --------------------------------------------------------------------------- #
def pn_tta_head(features_test, features_train, way, shot, patch_query, patch_support,
                *, scale_cls=10.0, lambd=0.0,
                nq_tiles=None, crop_chunk=None, channel_block=None):
    """JAX/Pallas equivalent of PN_TTA_head.forward (cosine metric, normalize=True)."""
    B, nq, c, h, w = features_test.shape
    Bs, ws, crop, cs, ph, pw = patch_support.shape
    assert Bs == B and cs == c and ws == way * shot
    assert patch_query.shape == (B, nq, crop, c, ph, pw)
    assert features_train.shape == (B, way * shot, c, h, w)
    hw = h * w
    phw = ph * pw
    K = c * phw

    lambd = float(lambd)
    use_feat = lambd != 0.0
    use_patch = lambd != 1.0

    f32 = jnp.float32
    scale = jnp.asarray([scale_cls], f32)
    out_shape = jax.ShapeDtypeStruct((B, nq, way), f32)

    cap = _vmem_capacity_bytes()
    budget = max(cap - (8 << 20), 16 << 20)

    # ------------- whole-image feature branch (pre-pooled, lambd > 0) ------- #
    ftepool = protoft = None
    qtf = 1
    if use_feat:
        fte_in = features_test.reshape(B, nq, c, hw)            # free reshape
        ftr_in = features_train.reshape(B, shot, way, c, hw)    # free reshape
        qtf_opts = [d for d in _divisors(nq) if (nq // d) % 8 == 0 or d == 1]
        qtf = qtf_opts[-1]
        for d in qtf_opts:
            nqt = nq // d
            need = (2 * _blk_bytes((nqt, c, hw), fte_in.dtype)
                    + 2 * _blk_bytes((shot, way, c, hw), ftr_in.dtype)
                    + 2 * _blk_bytes((nqt, c), f32) + 2 * _blk_bytes((way, c), f32)
                    + (4 << 20))
            if need <= budget:
                qtf = d
                break
        nqtf = nq // qtf
        feat_need = (2 * _blk_bytes((nqtf, c, hw), fte_in.dtype)
                     + 2 * _blk_bytes((shot, way, c, hw), ftr_in.dtype)
                     + 2 * _blk_bytes((nqtf, c), f32) + 2 * _blk_bytes((way, c), f32)
                     + (8 << 20))
        ftepool, protoft = pl.pallas_call(
            _feat_pool_kernel,
            out_shape=(jax.ShapeDtypeStruct((B, nq, c), f32),
                       jax.ShapeDtypeStruct((B, way, c), f32)),
            grid_spec=pltpu.PrefetchScalarGridSpec(
                num_scalar_prefetch=0,
                grid=(B, qtf),
                in_specs=[
                    pl.BlockSpec((pl.Squeezed(), nqtf, c, hw),
                                 lambda b, q: (b, q, 0, 0)),
                    pl.BlockSpec((pl.Squeezed(), shot, way, c, hw),
                                 lambda b, q: (b, 0, 0, 0, 0)),
                ],
                out_specs=[
                    pl.BlockSpec((pl.Squeezed(), nqtf, c), lambda b, q: (b, q, 0)),
                    pl.BlockSpec((pl.Squeezed(), way, c), lambda b, q: (b, 0, 0)),
                ],
            ),
            compiler_params=pltpu.CompilerParams(
                dimension_semantics=("parallel", "arbitrary"),
                vmem_limit_bytes=int(min(budget, max(feat_need, 32 << 20))),
            ),
        )(fte_in, ftr_in)

    if not use_patch:
        # lambd == 1: patch branch is dead -> never DMA'd, never computed.
        nqtf = nq // qtf
        return pl.pallas_call(
            _feat_score_kernel,
            out_shape=out_shape,
            grid_spec=pltpu.PrefetchScalarGridSpec(
                num_scalar_prefetch=0,
                grid=(B, qtf),
                in_specs=[
                    pl.BlockSpec(memory_space=pltpu.MemorySpace.SMEM),
                    pl.BlockSpec((pl.Squeezed(), nqtf, c), lambda b, q: (b, q, 0)),
                    pl.BlockSpec((pl.Squeezed(), way, c), lambda b, q: (b, 0, 0)),
                ],
                out_specs=pl.BlockSpec((pl.Squeezed(), nqtf, way),
                                       lambda b, q: (b, q, 0)),
            ),
            compiler_params=pltpu.CompilerParams(
                dimension_semantics=("parallel", "parallel"),
                vmem_limit_bytes=32 << 20,
            ),
        )(scale, ftepool, protoft)

    # ------------- patch branch: lane-dense streaming reduction ------------- #
    pq_in = patch_query.reshape(B, nq, crop * K)              # free (trailing dims contiguous)
    ps_in = patch_support.reshape(B, shot, way, crop * K)     # free

    cb = _pick_channel_block(c, phw, channel_block)
    # 0/1 selector matrices (host-built constants; resident, single-buffered)
    jidx = np.arange(cb * phw)
    sel_pix = jnp.asarray(jidx[:, None] % phw == np.arange(phw)[None, :], f32)
    sel_chan = jnp.asarray(jidx[:, None] // phw == np.arange(cb)[None, :], f32)

    qt, cc, need = _choose_patch_tiling(nq, crop, K, c, phw, cb, way, shot,
                                        patch_query.dtype, use_feat, budget,
                                        nq_tiles=nq_tiles, crop_chunk=crop_chunk)
    nqt = nq // qt
    ct = crop // cc

    in_specs = [
        pl.BlockSpec(memory_space=pltpu.MemorySpace.SMEM),                 # scale_cls
        pl.BlockSpec((cb * phw, phw), lambda b, q, t: (0, 0)),             # sel_pix
        pl.BlockSpec((cb * phw, cb), lambda b, q, t: (0, 0)),              # sel_chan
    ]
    inputs = [scale, sel_pix, sel_chan]
    if use_feat:
        in_specs += [
            pl.BlockSpec((pl.Squeezed(), nqt, c), lambda b, q, t: (b, q, 0)),
            pl.BlockSpec((pl.Squeezed(), way, c), lambda b, q, t: (b, 0, 0)),
        ]
        inputs += [ftepool, protoft]
    in_specs += [
        pl.BlockSpec((pl.Squeezed(), nqt, cc * K), lambda b, q, t: (b, q, t)),
        pl.BlockSpec((pl.Squeezed(), shot, way, cc * K), lambda b, q, t: (b, 0, 0, t)),
    ]
    inputs += [pq_in, ps_in]

    out_spec = pl.BlockSpec((pl.Squeezed(), nqt, way), lambda b, q, t: (b, q, 0))

    scratch = [
        pltpu.VMEM((nqt, K), f32),    # crop-sum of patch_query (lane-dense)
        pltpu.VMEM((way, K), f32),    # shot*crop-sum of patch_support (lane-dense)
        pltpu.VMEM((nqt, c), f32),    # normalized+pooled query patches
        pltpu.VMEM((way, c), f32),    # normalized+pooled support patches
    ]

    kernel = functools.partial(_patch_kernel, lambd=lambd, use_feat=use_feat,
                               shot=shot, crop=crop, phw=phw, cb=cb, cc=cc, K=K)

    vmem_limit = int(min(budget, max(need + (4 << 20), 32 << 20)))

    return pl.pallas_call(
        kernel,
        out_shape=out_shape,
        grid_spec=pltpu.PrefetchScalarGridSpec(
            num_scalar_prefetch=0,
            grid=(B, qt, ct),
            in_specs=in_specs,
            out_specs=out_spec,
            scratch_shapes=scratch,
        ),
        compiler_params=pltpu.CompilerParams(
            dimension_semantics=("parallel", "parallel", "arbitrary"),
            vmem_limit_bytes=vmem_limit,
        ),
    )(*inputs)


# --------------------------------------------------------------------------- #
# Pure-JAX reference (mirror of the PyTorch forward) for verification
# --------------------------------------------------------------------------- #
def pn_tta_head_ref(features_test, features_train, way, shot, patch_query, patch_support,
                    *, scale_cls=10.0, lambd=0.0):
    def norm(x, axis):
        n = jnp.sqrt(jnp.sum(x * x, axis=axis, keepdims=True))
        return x / jnp.maximum(n, _EPS)

    B, ws, crop, c, ph, pw = patch_support.shape
    ftr = norm(features_train, 2)
    ps = patch_support.reshape(B, shot, way, crop, c, ph, pw)
    ps = jnp.transpose(ps, (0, 2, 1, 3, 4, 5, 6)).reshape(B, way, shot * crop, c, ph, pw)
    pc = norm(jnp.mean(ps, axis=2), -3)
    ftr = jnp.mean(ftr, axis=(-2, -1))
    pc = jnp.mean(pc, axis=(-2, -1))
    ftr = norm(ftr, 2)
    pc = norm(pc, -1)
    proto = jnp.mean(ftr.reshape(B, shot, way, -1), axis=1)
    proto = lambd * proto + (1.0 - lambd) * pc
    proto = norm(proto, 2)
    pq = jnp.mean(patch_query, axis=2)
    fte = norm(features_test, 2)
    pq = norm(pq, 2)
    fte = jnp.mean(fte, axis=(-2, -1))
    pq = jnp.mean(pq, axis=(-2, -1))
    fte = lambd * fte + (1.0 - lambd) * pq
    fte = norm(fte, 2)
    return scale_cls * jnp.einsum("bqc,bwc->bqw", fte, proto)


# --------------------------------------------------------------------------- #
# Self-test
# --------------------------------------------------------------------------- #
def _run_case(key, *, B, way, shot, nq, c, h, w, crop, ph, pw, lambds, **kw):
    k1, k2, k3, k4 = jax.random.split(key, 4)
    features_test = jax.random.normal(k1, (B, nq, c, h, w), jnp.float32)
    features_train = jax.random.normal(k2, (B, way * shot, c, h, w), jnp.float32)
    patch_query = jax.random.normal(k3, (B, nq, crop, c, ph, pw), jnp.float32)
    patch_support = jax.random.normal(k4, (B, way * shot, crop, c, ph, pw), jnp.float32)
    for lambd in lambds:
        out = pn_tta_head(features_test, features_train, way, shot,
                          patch_query, patch_support,
                          scale_cls=10.0, lambd=lambd, **kw)
        out = jax.block_until_ready(out)
        ref = pn_tta_head_ref(features_test, features_train, way, shot,
                              patch_query, patch_support,
                              scale_cls=10.0, lambd=lambd)
        ref = jax.block_until_ready(ref)
        assert out.shape == (B, nq, way), out.shape
        np.testing.assert_allclose(np.asarray(out), np.asarray(ref),
                                   rtol=2e-4, atol=2e-4)


if __name__ == "__main__":
    key = jax.random.PRNGKey(0)
    k1, k2, k3 = jax.random.split(key, 3)

    # Case 1: auto tiling (whole crop per step, 2 query tiles), all lambda paths.
    _run_case(k1, B=2, way=5, shot=2, nq=16, c=32, h=4, w=4, crop=3, ph=4, pw=4,
              lambds=(0.0, 0.5, 1.0))

    # Case 2: forced crop chunking (2 crops/step) + multi-block finalize.
    _run_case(k2, B=1, way=4, shot=2, nq=8, c=64, h=2, w=2, crop=4, ph=4, pw=4,
              lambds=(0.0, 0.5), crop_chunk=2, channel_block=16)

    # Case 3: one crop per step (tight-VMEM style streaming).
    _run_case(k3, B=1, way=4, shot=2, nq=8, c=64, h=2, w=2, crop=4, ph=4, pw=4,
              lambds=(0.0,), crop_chunk=1)

    print("KERNEL_OK")
</pallas_src>

<mosaic_0001>
module attributes {stable_mosaic.version = 11 : i64} {
  func.func @_patch_kernel(%arg0: i32, %arg1: i32, %arg2: i32, %arg3: memref<1xf32, #tpu.memory_space<smem>>, %arg4: memref<512x16xf32, #tpu.memory_space<vmem>>, %arg5: memref<512x32xf32, #tpu.memory_space<vmem>>, %arg6: memref<1x8x1536xf32, #tpu.memory_space<vmem>>, %arg7: memref<1x2x5x1536xf32, #tpu.memory_space<vmem>>, %arg8: memref<1x8x5xf32, #tpu.memory_space<vmem>>, %arg9: memref<8x512xf32, #tpu.memory_space<vmem>>, %arg10: memref<5x512xf32, #tpu.memory_space<vmem>>, %arg11: memref<8x32xf32, #tpu.memory_space<vmem>>, %arg12: memref<5x32xf32, #tpu.memory_space<vmem>>) attributes {dimension_semantics = [#tpu.dimension_semantics<parallel>, #tpu.dimension_semantics<parallel>, #tpu.dimension_semantics<arbitrary>], iteration_bounds = array<i64: 2, 2, 1>, scalar_prefetch = 0 : i64, scratch_operands = 4 : i64, tpu.core_type = #tpu.core_type<tc>, window_params = [{transform_indices = @transform_0, window_bounds = array<i64: 1>}, {pipeline_mode = #tpu.pipeline_mode<synchronous>, transform_indices = @transform_1, window_bounds = array<i64: 512, 16>}, {pipeline_mode = #tpu.pipeline_mode<synchronous>, transform_indices = @transform_2, window_bounds = array<i64: 512, 32>}, {transform_indices = @transform_3, window_bounds = array<i64: 1, 8, 1536>}, {transform_indices = @transform_4, window_bounds = array<i64: 1, 2, 5, 1536>}, {transform_indices = @transform_5, window_bounds = array<i64: 1, 8, 5>}]} {
    %c0_i32 = arith.constant 0 : i32
    %0 = arith.cmpi eq, %arg2, %c0_i32 : i32
    %1 = arith.extui %0 : i1 to i32
    %c0_i32_0 = arith.constant 0 : i32
    %2 = arith.cmpi ne, %1, %c0_i32_0 : i32
    scf.if %2 {
      %cst_29 = arith.constant 0.000000e+00 : f32
      %29 = vector.broadcast %cst_29 : f32 to vector<8x512xf32>
      %c0_30 = arith.constant 0 : index
      %c0_31 = arith.constant 0 : index
      %30 = vector.load %arg9[%c0_30, %c0_31] : memref<8x512xf32, #tpu.memory_space<vmem>>, vector<8x512xf32>
      tpu.vector_store %arg9[%c0_30, %c0_31], %29 {strides = array<i32>} : memref<8x512xf32, #tpu.memory_space<vmem>>, vector<8x512xf32>,
      %cst_32 = arith.constant 0.000000e+00 : f32
      %31 = vector.broadcast %cst_32 : f32 to vector<5x512xf32>
      %c0_33 = arith.constant 0 : index
      %c0_34 = arith.constant 0 : index
      %32 = vector.load %arg10[%c0_33, %c0_34] : memref<5x512xf32, #tpu.memory_space<vmem>>, vector<5x512xf32>
      tpu.vector_store %arg10[%c0_33, %c0_34], %31 {strides = array<i32>} : memref<5x512xf32, #tpu.memory_space<vmem>>, vector<5x512xf32>,
    } else {
    }
    %c0 = arith.constant 0 : index
    %c0_1 = arith.constant 0 : index
    %c0_2 = arith.constant 0 : index
    %3 = vector.load %arg6[%c0, %c0_1, %c0_2] : memref<1x8x1536xf32, #tpu.memory_space<vmem>>, vector<1x8x512xf32>
    %4 = vector.shape_cast %3 : vector<1x8x512xf32> to vector<8x512xf32>
    %c0_3 = arith.constant 0 : index
    %c0_4 = arith.constant 0 : index
    %c512 = arith.constant 512 : index
    %5 = vector.load %arg6[%c0_3, %c0_4, %c512] : memref<1x8x1536xf32, #tpu.memory_space<vmem>>, vector<1x8x512xf32>
    %6 = vector.shape_cast %5 : vector<1x8x512xf32> to vector<8x512xf32>
    %7 = arith.addf %4, %6 : vector<8x512xf32>
    %c0_5 = arith.constant 0 : index
    %c0_6 = arith.constant 0 : index
    %c1024 = arith.constant 1024 : index
    %8 = vector.load %arg6[%c0_5, %c0_6, %c1024] : memref<1x8x1536xf32, #tpu.memory_space<vmem>>, vector<1x8x512xf32>
    %9 = vector.shape_cast %8 : vector<1x8x512xf32> to vector<8x512xf32>
    %10 = arith.addf %7, %9 : vector<8x512xf32>
    %c0_7 = arith.constant 0 : index
    %c0_8 = arith.constant 0 : index
    %11 = vector.load %arg9[%c0_7, %c0_8] : memref<8x512xf32, #tpu.memory_space<vmem>>, vector<8x512xf32>
    %12 = arith.addf %11, %10 : vector<8x512xf32>
    %c0_9 = arith.constant 0 : index
    %c0_10 = arith.constant 0 : index
    %13 = vector.load %arg9[%c0_9, %c0_10] : memref<8x512xf32, #tpu.memory_space<vmem>>, vector<8x512xf32>
    tpu.vector_store %arg9[%c0_9, %c0_10], %12 {strides = array<i32>} : memref<8x512xf32, #tpu.memory_space<vmem>>, vector<8x512xf32>,
    %c0_11 = arith.constant 0 : index
    %c0_12 = arith.constant 0 : index
    %c0_13 = arith.constant 0 : index
    %c0_14 = arith.constant 0 : index
    %14 = vector.load %arg7[%c0_11, %c0_12, %c0_13, %c0_14] : memref<1x2x5x1536xf32, #tpu.memory_space<vmem>>, vector<1x2x5x512xf32>
    %15 = vector.shape_cast %14 : vector<1x2x5x512xf32> to vector<2x5x512xf32>
    %c0_15 = arith.constant 0 : index
    %c0_16 = arith.constant 0 : index
    %c0_17 = arith.constant 0 : index
    %c512_18 = arith.constant 512 : index
    %16 = vector.load %arg7[%c0_15, %c0_16, %c0_17, %c512_18] : memref<1x2x5x1536xf32, #tpu.memory_space<vmem>>, vector<1x2x5x512xf32>
    %17 = vector.shape_cast %16 : vector<1x2x5x512xf32> to vector<2x5x512xf32>
    %18 = arith.addf %15, %17 : vector<2x5x512xf32>
    %c0_19 = arith.constant 0 : index
    %c0_20 = arith.constant 0 : index
    %c0_21 = arith.constant 0 : index
    %c1024_22 = arith.constant 1024 : index
    %19 = vector.load %arg7[%c0_19, %c0_20, %c0_21, %c1024_22] : memref<1x2x5x1536xf32, #tpu.memory_space<vmem>>, vector<1x2x5x512xf32>
    %20 = vector.shape_cast %19 : vector<1x2x5x512xf32> to vector<2x5x512xf32>
    %21 = arith.addf %18, %20 : vector<2x5x512xf32>
    %c0_23 = arith.constant 0 : index
    %c0_24 = arith.constant 0 : index
    %22 = vector.load %arg10[%c0_23, %c0_24] : memref<5x512xf32, #tpu.memory_space<vmem>>, vector<5x512xf32>
    %cst = arith.constant dense<0.000000e+00> : vector<5x512xf32>
    %23 = vector.multi_reduction <add>, %21, %cst [0] : vector<2x5x512xf32> to vector<5x512xf32>
    %24 = arith.addf %22, %23 : vector<5x512xf32>
    %c0_25 = arith.constant 0 : index
    %c0_26 = arith.constant 0 : index
    %25 = vector.load %arg10[%c0_25, %c0_26] : memref<5x512xf32, #tpu.memory_space<vmem>>, vector<5x512xf32>
    tpu.vector_store %arg10[%c0_25, %c0_26], %24 {strides = array<i32>} : memref<5x512xf32, #tpu.memory_space<vmem>>, vector<5x512xf32>,
    %c0_i32_27 = arith.constant 0 : i32
    %26 = arith.cmpi eq, %arg2, %c0_i32_27 : i32
    %27 = arith.extui %26 : i1 to i32
    %c0_i32_28 = arith.constant 0 : i32
    %28 = arith.cmpi ne, %27, %c0_i32_28 : i32
    scf.if %28 {
      %c0_29 = arith.constant 0 : index
      %c0_30 = arith.constant 0 : index
      %29 = vector.load %arg4[%c0_29, %c0_30] : memref<512x16xf32, #tpu.memory_space<vmem>>, vector<512x16xf32>
      %c0_31 = arith.constant 0 : index
      %c0_32 = arith.constant 0 : index
      %30 = vector.load %arg5[%c0_31, %c0_32] : memref<512x32xf32, #tpu.memory_space<vmem>>, vector<512x32xf32>
      %cst_33 = arith.constant 0.000000e+00 : f32
      %31 = vector.broadcast %cst_33 : f32 to vector<8x16xf32>
      %c0_34 = arith.constant 0 : index
      %c0_35 = arith.constant 0 : index
      %32 = vector.load %arg9[%c0_34, %c0_35] : memref<8x512xf32, #tpu.memory_space<vmem>>, vector<8x512xf32>
      %cst_36 = arith.constant 0.333333343 : f32
      %33 = vector.broadcast %cst_36 : f32 to vector<8x512xf32>
      %34 = arith.mulf %32, %33 : vector<8x512xf32>
      %35 = arith.mulf %34, %34 : vector<8x512xf32>
      %cst_37 = arith.constant dense<0.000000e+00> : vector<8x16xf32>
      %36 = tpu.matmul %35, %29, %cst_37 {dimension_numbers = #tpu.dot_dimension_numbers<[1], [0], [0], [1], [0, 0, 1, 1], [], []>} : vector<8x512xf32>, vector<512x16xf32>, vector<8x16xf32> -> vector<8x16xf32>
      %37 = arith.addf %31, %36 : vector<8x16xf32>
      %cst_38 = arith.constant 1.000000e-24 : f32
      %38 = vector.broadcast %cst_38 : f32 to vector<8x16xf32>
      %39 = arith.maximumf %37, %38 : vector<8x16xf32>
      %40 = math.rsqrt %39 : vector<8x16xf32>
      %cst_39 = arith.constant dense<0.000000e+00> : vector<8x512xf32>
      %41 = tpu.matmul %40, %29, %cst_39 {dimension_numbers = #tpu.dot_dimension_numbers<[1], [1], [0], [0], [0, 0, 1, 0], [], []>} : vector<8x16xf32>, vector<512x16xf32>, vector<8x512xf32> -> vector<8x512xf32>
      %c0_40 = arith.constant 0 : index
      %c0_41 = arith.constant 0 : index
      %42 = vector.load %arg9[%c0_40, %c0_41] : memref<8x512xf32, #tpu.memory_space<vmem>>, vector<8x512xf32>
      %cst_42 = arith.constant 0.333333343 : f32
      %43 = vector.broadcast %cst_42 : f32 to vector<8x512xf32>
      %44 = arith.mulf %42, %43 : vector<8x512xf32>
      %45 = arith.mulf %44, %41 : vector<8x512xf32>
      %cst_43 = arith.constant dense<0.000000e+00> : vector<8x32xf32>
      %46 = tpu.matmul %45, %30, %cst_43 {dimension_numbers = #tpu.dot_dimension_numbers<[1], [0], [0], [1], [0, 0, 1, 1], [], []>} : vector<8x512xf32>, vector<512x32xf32>, vector<8x32xf32> -> vector<8x32xf32>
      %cst_44 = arith.constant 6.250000e-02 : f32
      %47 = vector.broadcast %cst_44 : f32 to vector<8x32xf32>
      %48 = arith.mulf %46, %47 : vector<8x32xf32>
      %c0_45 = arith.constant 0 : index
      %c0_46 = arith.constant 0 : index
      %49 = vector.load %arg11[%c0_45, %c0_46] : memref<8x32xf32, #tpu.memory_space<vmem>>, vector<8x32xf32>
      tpu.vector_store %arg11[%c0_45, %c0_46], %48 {strides = array<i32>} : memref<8x32xf32, #tpu.memory_space<vmem>>, vector<8x32xf32>,
      %cst_47 = arith.constant 0.000000e+00 : f32
      %50 = vector.broadcast %cst_47 : f32 to vector<5x16xf32>
      %c0_48 = arith.constant 0 : index
      %c0_49 = arith.constant 0 : index
      %51 = vector.load %arg10[%c0_48, %c0_49] : memref<5x512xf32, #tpu.memory_space<vmem>>, vector<5x512xf32>
      %cst_50 = arith.constant 0.166666672 : f32
      %52 = vector.broadcast %cst_50 : f32 to vector<5x512xf32>
      %53 = arith.mulf %51, %52 : vector<5x512xf32>
      %54 = arith.mulf %53, %53 : vector<5x512xf32>
      %cst_51 = arith.constant dense<0.000000e+00> : vector<5x16xf32>
      %55 = tpu.matmul %54, %29, %cst_51 {dimension_numbers = #tpu.dot_dimension_numbers<[1], [0], [0], [1], [0, 0, 1, 1], [], []>} : vector<5x512xf32>, vector<512x16xf32>, vector<5x16xf32> -> vector<5x16xf32>
      %56 = arith.addf %50, %55 : vector<5x16xf32>
      %cst_52 = arith.constant 1.000000e-24 : f32
      %57 = vector.broadcast %cst_52 : f32 to vector<5x16xf32>
      %58 = arith.maximumf %56, %57 : vector<5x16xf32>
      %59 = math.rsqrt %58 : vector<5x16xf32>
      %cst_53 = arith.constant dense<0.000000e+00> : vector<5x512xf32>
      %60 = tpu.matmul %59, %29, %cst_53 {dimension_numbers = #tpu.dot_dimension_numbers<[1], [1], [0], [0], [0, 0, 1, 0], [], []>} : vector<5x16xf32>, vector<512x16xf32>, vector<5x512xf32> -> vector<5x512xf32>
      %c0_54 = arith.constant 0 : index
      %c0_55 = arith.constant 0 : index
      %61 = vector.load %arg10[%c0_54, %c0_55] : memref<5x512xf32, #tpu.memory_space<vmem>>, vector<5x512xf32>
      %cst_56 = arith.constant 0.166666672 : f32
      %62 = vector.broadcast %cst_56 : f32 to vector<5x512xf32>
      %63 = arith.mulf %61, %62 : vector<5x512xf32>
      %64 = arith.mulf %63, %60 : vector<5x512xf32>
      %cst_57 = arith.constant dense<0.000000e+00> : vector<5x32xf32>
      %65 = tpu.matmul %64, %30, %cst_57 {dimension_numbers = #tpu.dot_dimension_numbers<[1], [0], [0], [1], [0, 0, 1, 1], [], []>} : vector<5x512xf32>, vector<512x32xf32>, vector<5x32xf32> -> vector<5x32xf32>
      %cst_58 = arith.constant 6.250000e-02 : f32
      %66 = vector.broadcast %cst_58 : f32 to vector<5x32xf32>
      %67 = arith.mulf %65, %66 : vector<5x32xf32>
      %c0_59 = arith.constant 0 : index
      %c0_60 = arith.constant 0 : index
      %68 = vector.load %arg12[%c0_59, %c0_60] : memref<5x32xf32, #tpu.memory_space<vmem>>, vector<5x32xf32>
      tpu.vector_store %arg12[%c0_59, %c0_60], %67 {strides = array<i32>} : memref<5x32xf32, #tpu.memory_space<vmem>>, vector<5x32xf32>,
      %c0_61 = arith.constant 0 : index
      %c0_62 = arith.constant 0 : index
      %69 = vector.load %arg11[%c0_61, %c0_62] : memref<8x32xf32, #tpu.memory_space<vmem>>, vector<8x32xf32>
      %c0_63 = arith.constant 0 : index
      %c0_64 = arith.constant 0 : index
      %70 = vector.load %arg12[%c0_63, %c0_64] : memref<5x32xf32, #tpu.memory_space<vmem>>, vector<5x32xf32>
      %71 = arith.mulf %70, %70 : vector<5x32xf32>
      %cst_65 = arith.constant dense<0.000000e+00> : vector<5xf32>
      %72 = vector.multi_reduction <add>, %71, %cst_65 [1] : vector<5x32xf32> to vector<5xf32>
      %73 = vector.shape_cast %72 : vector<5xf32> to vector<5x1xf32>
      %cst_66 = arith.constant 1.000000e-24 : f32
      %74 = vector.broadcast %cst_66 : f32 to vector<5x1xf32>
      %75 = arith.maximumf %73, %74 : vector<5x1xf32>
      %76 = math.rsqrt %75 : vector<5x1xf32>
      %77 = vector.broadcast %76 : vector<5x1xf32> to vector<5x32xf32>
      %78 = arith.mulf %70, %77 : vector<5x32xf32>
      %c0_67 = arith.constant 0 : index
      %79 = memref.load %arg3[%c0_67] : memref<1xf32, #tpu.memory_space<smem>>
      %80 = arith.mulf %69, %69 : vector<8x32xf32>
      %cst_68 = arith.constant dense<0.000000e+00> : vector<8xf32>
      %81 = vector.multi_reduction <add>, %80, %cst_68 [1] : vector<8x32xf32> to vector<8xf32>
      %82 = vector.shape_cast %81 : vector<8xf32> to vector<8x1xf32>
      %cst_69 = arith.constant 1.000000e-24 : f32
      %83 = vector.broadcast %cst_69 : f32 to vector<8x1xf32>
      %84 = arith.maximumf %82, %83 : vector<8x1xf32>
      %85 = math.rsqrt %84 : vector<8x1xf32>
      %86 = vector.broadcast %85 : vector<8x1xf32> to vector<8x32xf32>
      %87 = arith.mulf %69, %86 : vector<8x32xf32>
      %88 = arith.mulf %78, %78 : vector<5x32xf32>
      %cst_70 = arith.constant dense<0.000000e+00> : vector<5xf32>
      %89 = vector.multi_reduction <add>, %88, %cst_70 [1] : vector<5x32xf32> to vector<5xf32>
      %90 = vector.shape_cast %89 : vector<5xf32> to vector<5x1xf32>
      %cst_71 = arith.constant 1.000000e-24 : f32
      %91 = vector.broadcast %cst_71 : f32 to vector<5x1xf32>
      %92 = arith.maximumf %90, %91 : vector<5x1xf32>
      %93 = math.rsqrt %92 : vector<5x1xf32>
      %94 = vector.broadcast %93 : vector<5x1xf32> to vector<5x32xf32>
      %95 = arith.mulf %78, %94 : vector<5x32xf32>
      %cst_72 = arith.constant dense<0.000000e+00> : vector<8x5xf32>
      %96 = tpu.matmul %87, %95, %cst_72 {dimension_numbers = #tpu.dot_dimension_numbers<[1], [1], [0], [0], [0, 0, 1, 0], [], []>} : vector<8x32xf32>, vector<5x32xf32>, vector<8x5xf32> -> vector<8x5xf32>
      %97 = vector.broadcast %79 : f32 to vector<8x5xf32>
      %98 = arith.mulf %97, %96 : vector<8x5xf32>
      %c0_73 = arith.constant 0 : index
      %c0_74 = arith.constant 0 : index
      %c0_75 = arith.constant 0 : index
      %99 = vector.load %arg8[%c0_73, %c0_74, %c0_75] : memref<1x8x5xf32, #tpu.memory_space<vmem>>, vector<1x8x5xf32>
      %100 = vector.shape_cast %99 : vector<1x8x5xf32> to vector<8x5xf32>
      %101 = vector.shape_cast %98 : vector<8x5xf32> to vector<1x8x5xf32>
      tpu.vector_store %arg8[%c0_73, %c0_74, %c0_75], %101 {strides = array<i32>} : memref<1x8x5xf32, #tpu.memory_space<vmem>>, vector<1x8x5xf32>,
    } else {
    }
    return
  }
  func.func @transform_0(%arg0: i32, %arg1: i32, %arg2: i32) -> i32 {
    %c0_i32 = arith.constant 0 : i32
    %c0_i32_0 = arith.constant 0 : i32
    return %c0_i32 : i32
  }
  func.func @transform_1(%arg0: i32, %arg1: i32, %arg2: i32) -> (i32, i32) {
    %c0_i32 = arith.constant 0 : i32
    %c0_i32_0 = arith.constant 0 : i32
    %c0_i32_1 = arith.constant 0 : i32
    return %c0_i32, %c0_i32_0 : i32, i32
  }
  func.func @transform_2(%arg0: i32, %arg1: i32, %arg2: i32) -> (i32, i32) {
    %c0_i32 = arith.constant 0 : i32
    %c0_i32_0 = arith.constant 0 : i32
    %c0_i32_1 = arith.constant 0 : i32
    return %c0_i32, %c0_i32_0 : i32, i32
  }
  func.func @transform_3(%arg0: i32, %arg1: i32, %arg2: i32) -> (i32, i32, i32) {
    %c0_i32 = arith.constant 0 : i32
    return %arg0, %arg1, %arg2 : i32, i32, i32
  }
  func.func @transform_4(%arg0: i32, %arg1: i32, %arg2: i32) -> (i32, i32, i32, i32) {
    %c0_i32 = arith.constant 0 : i32
    %c0_i32_0 = arith.constant 0 : i32
    %c0_i32_1 = arith.constant 0 : i32
    return %arg0, %c0_i32, %c0_i32_0, %arg2 : i32, i32, i32, i32
  }
  func.func @transform_5(%arg0: i32, %arg1: i32, %arg2: i32) -> (i32, i32, i32) {
    %c0_i32 = arith.constant 0 : i32
    %c0_i32_0 = arith.constant 0 : i32
    return %arg0, %arg1, %c0_i32 : i32, i32, i32
  }
}

</mosaic_0001>

<bundles_post_ra>
// kernel: tpu_custom_call.1
= control target key start
LH: loop header
LB: loop body
LE: loop exit
PB: predicated region body
PF: predicated region fallthrough
CT: control target
= control target key end

     0   :  { %s3007_s20 = smov 0   ;;  %s3009_s21 = smov 0   ;;  %s4034_s0 = inlined_call_operand.<no memory space> [shape: f32[1], index: 0, kind: input, shape index: {}]   ;;  %s4035_s1 = inlined_call_operand.vmem [shape: f32[512,16], index: 1, kind: input, shape index: {}]   ;;  %s4036_s2 = inlined_call_operand.vmem [shape: f32[512,32], index: 2, kind: input, shape index: {}]   ;;  %s4037_s3 = inlined_call_operand.vmem [shape: f32[2,16,1536], index: 3, kind: input, shape index: {}]   ;;  %s4038_s4 = inlined_call_operand.vmem [shape: f32[2,2,5,1536], index: 4, kind: input, shape index: {}]   ;;  %s4039_s5 = inlined_call_operand.vmem [shape: f32[2,16,5], index: 5, kind: output, shape index: {}]  }
   0x1   :  { %10 = sst [smem:[#allocation6]] %s4034_s0  ;;  %s3011_s22 = smov 0  }
   0x2   :  { %s3013_s23 = smov 0   ;;  %s3015_s24 = smov 0  }
   0x3 LB: > { %s31_s0 = sadd.s32 1, %s2962_s22  ;;  %s35_s25 = sadd.s32 1, %s2966_s23  ;;  %s2970_s24 = sphi %s3015_s24, %s16_s24   ;;  %s2966_s23 = sphi %s3013_s23, %s4141_s23   ;;  %s2962_s22 = sphi %s3011_s22, %s4140_s22   ;;  %s2958_s21 = sphi %s3009_s21, %s4139_s21   ;;  %s2954_s20 = sphi %s3007_s20, %s4138_s20  }
   0x4   : > { %p33_p0 = scmp.ge.s32.totalorder %s31_s0, 2  ;;  %p1865_p1 = scmp.ge.s32.totalorder %s2970_s24, 1 }
   0x5   : > { %p239_p2 = scmp.lt.s32.totalorder %s2970_s24, 5 }
   0x6   : > { %s4143_s0 = smov (%p33_p0, %s31_s0), 0  ;;  %s4145_s25 = smov (!%p33_p0, %s35_s25), %s2966_s23 }
   0x7   : > { %p240_p3 = pnand %p1865_p1, %p239_p2  ;;  %p37_p4 = scmp.ge.s32.totalorder %s4145_s25, 2 }
   0x9   : > { %s4147_s25 = smov (%p37_p4, %s4145_s25), 0  ;;  %243 = sbr.rel (%p240_p3) target bundleno = 1744 (0x6d0), region = 40 }
  0x10   : > { %v447_v0 = vld [vmem:[%s4035_s1 + $0x80] sm:$0xff]  ;;  %v448_v1 = vld [vmem:[%s4035_s1 + $0x88] sm:$0xff]  ;;  %p288_p5 = scmp.lt.s32.totalorder %s2958_s21, 1  ;;  %p290_p6 = scmp.lt.s32.totalorder %s2954_s20, 1  ;;  %v449_v11 = vld [vmem:[%s4035_s1 + $0x90] sm:$0xff]  ;;  %vm713_vm0 = vcmask 130048  }
  0x11   : > { %v479_v2 = vld [vmem:[%s4035_s1 + $0x180] sm:$0xff]  ;;  %v3052_v3 = vpack.c.bf16 %v448_v1, %v447_v0  ;;  %v480_v4 = vld [vmem:[%s4035_s1 + $0x188] sm:$0xff]  ;;  %v450_v13 = vld [vmem:[%s4035_s1 + $0x98] sm:$0xff]  ;;  %vm407_vm2 = vcmask 1044480   ;;  %vm1196_vm3 = vcmask 261120   ;;  %vm1642_vm4 = vcmask 258048  }
  0x12   : > { %v431_v5 = vld [vmem:[%s4035_s1] sm:$0xff]  ;;  %v432_v6 = vld [vmem:[%s4035_s1 + $0x8] sm:$0xff]  ;;  %v3063_v7 = vpack.c.bf16 %v480_v4, %v479_v2  ;;  %v481_v14 = vld [vmem:[%s4035_s1 + $0x190] sm:$0xff]  ;;  %s4149_s21 = smov (!%p288_p5, %s2958_s21), 1  ;;  %v3095_v16 = vpack.c.bf16 %v450_v13, %v449_v11  ;;  %s4151_s20 = smov (!%p290_p6, %s2954_s20), 1  ;;  %vm2973_vm5 = vmmov 0  }
  0x13   : > { %v3065_v8 = vpack.c.bf16 %v432_v6, %v431_v5  ;;  %v463_v9 = vld [vmem:[%s4035_s1 + $0x100] sm:$0xff]  ;;  %v464_v10 = vld [vmem:[%s4035_s1 + $0x108] sm:$0xff]  ;;  %2430 = vmatprep.subr.bf16.mxu0 %v3052_v3  ;;  %v482_v15 = vld [vmem:[%s4035_s1 + $0x198] sm:$0xff]  ;;  %s2878_s11 = smul.u32 24, %s4149_s21  ;;  %s1653_s6 = sld [smem:[#allocation6]]  ;;  %vm1746_vm6 = vcmask 39936  }
  0x14   : > { %v3077_v12 = vpack.c.bf16 %v464_v10, %v463_v9  ;;  %2462 = vmatprep.subr.bf16.mxu1 %v3063_v7  ;;  %v3097_v17 = vpack.c.bf16 %v482_v15, %v481_v14  ;;  %v433_v18 = vld [vmem:[%s4035_s1 + $0x10] sm:$0xff]  ;;  %v434_v19 = vld [vmem:[%s4035_s1 + $0x18] sm:$0xff]  ;;  %v451_v23 = vld [vmem:[%s4035_s1 + $0xa0] sm:$0xff]  ;;  %s2877_s18 = smul.u32 12, %s4151_s20 }
  0x15   : > { %2432 = vmatpush3.bf16.msra.mxu0 %v3065_v8  ;;  %v465_v20 = vld [vmem:[%s4035_s1 + $0x110] sm:$0xff]  ;;  %v3114_v21 = vpack.c.bf16 %v434_v19, %v433_v18  ;;  %v466_v22 = vld [vmem:[%s4035_s1 + $0x118] sm:$0xff]  ;;  %v452_v24 = vld [vmem:[%s4035_s1 + $0xa8] sm:$0xff]  ;;  %s2879_s28 = smul.u32 192, %s4149_s21 }
  0x16   : > { %2464 = vmatpush3.bf16.msra.mxu1 %v3077_v12  ;;  %2434 = vmatprep.subr.bf16.mxu0 %v3095_v16  ;;  %v3127_v25 = vpack.c.bf16 %v466_v22, %v465_v20  ;;  %v3129_v26 = vpack.c.bf16 %v452_v24, %v451_v23  ;;  %v483_v27 = vld [vmem:[%s4035_s1 + $0x1a0] sm:$0xff]  ;;  %v484_v28 = vld [vmem:[%s4035_s1 + $0x1a8] sm:$0xff]  ;;  %v453_v35 = vld [vmem:[%s4035_s1 + $0xb0] sm:$0xff]  ;;  %s3204_s26 = sadd.s32 %s2878_s11, %s2877_s18 }
  0x17   : > { %2466 = vmatprep.subr.bf16.mxu1 %v3097_v17  ;;  %v435_v29 = vld [vmem:[%s4035_s1 + $0x20] sm:$0xff]  ;;  %v3140_v30 = vpack.c.bf16 %v484_v28, %v483_v27  ;;  %v436_v31 = vld [vmem:[%s4035_s1 + $0x28] sm:$0xff]  ;;  %v454_v36 = vld [vmem:[%s4035_s1 + $0xb8] sm:$0xff]  ;;  %s1866_s17 = sshll.u32 %s3204_s26, 3  ;;  %s3779_s30 = scalar_lea.vmem %s4038_s4, %s2879_s28 }
  0x18   : > { %v467_v32 = vld [vmem:[%s4035_s1 + $0x120] sm:$0xff]  ;;  %v468_v33 = vld [vmem:[%s4035_s1 + $0x128] sm:$0xff]  ;;  %v3153_v34 = vpack.c.bf16 %v436_v31, %v435_v29  ;;  %v485_v37 = vld [vmem:[%s4035_s1 + $0x1b0] sm:$0xff]  ;;  %v3169_v39 = vpack.c.bf16 %v454_v36, %v453_v35  ;;  %s3279_s19 = scalar_lea.vmem %s4037_s3, %s1866_s17 }
  0x19   : > { %2436 = vmatpush3.bf16.msra.mxu0 %v3114_v21  ;;  %v3167_v38 = vpack.c.bf16 %v468_v33, %v467_v32  ;;  %v486_v40 = vld [vmem:[%s4035_s1 + $0x1b8] sm:$0xff]  ;;  %v437_v41 = vld [vmem:[%s4035_s1 + $0x30] sm:$0xff]  ;;  %v455_v46 = vld [vmem:[%s4035_s1 + $0xc0] sm:$0xff] }
  0x1a   : > { %2468 = vmatpush3.bf16.msra.mxu1 %v3127_v25  ;;  %2438 = vmatprep.subr.bf16.mxu0 %v3129_v26  ;;  %v438_v42 = vld [vmem:[%s4035_s1 + $0x38] sm:$0xff]  ;;  %v3181_v43 = vpack.c.bf16 %v486_v40, %v485_v37  ;;  %v469_v44 = vld [vmem:[%s4035_s1 + $0x130] sm:$0xff]  ;;  %v456_v47 = vld [vmem:[%s4035_s1 + $0xc8] sm:$0xff] }
  0x1b   : > { %2470 = vmatprep.subr.bf16.mxu1 %v3140_v30  ;;  %v470_v45 = vld [vmem:[%s4035_s1 + $0x138] sm:$0xff]  ;;  %v487_v48 = vld [vmem:[%s4035_s1 + $0x1c0] sm:$0xff]  ;;  %v488_v49 = vld [vmem:[%s4035_s1 + $0x1c8] sm:$0xff]  ;;  %v3202_v50 = vpack.c.bf16 %v438_v42, %v437_v41  ;;  %v3210_v52 = vpack.c.bf16 %v456_v47, %v455_v46 }
  0x1c   : > { %v3208_v51 = vpack.c.bf16 %v470_v45, %v469_v44  ;;  %v439_v53 = vld [vmem:[%s4035_s1 + $0x40] sm:$0xff]  ;;  %v440_v54 = vld [vmem:[%s4035_s1 + $0x48] sm:$0xff]  ;;  %v3222_v56 = vpack.c.bf16 %v488_v49, %v487_v48  ;;  %v457_v58 = vld [vmem:[%s4035_s1 + $0xd0] sm:$0xff] }
  0x1d   : > { %2440 = vmatpush3.bf16.msra.mxu0 %v3153_v34  ;;  %v471_v55 = vld [vmem:[%s4035_s1 + $0x140] sm:$0xff]  ;;  %v472_v57 = vld [vmem:[%s4035_s1 + $0x148] sm:$0xff]  ;;  %v458_v59 = vld [vmem:[%s4035_s1 + $0xd8] sm:$0xff]  ;;  %v3241_v62 = vpack.c.bf16 %v440_v54, %v439_v53 }
  0x1e   : > { %2472 = vmatpush3.bf16.msra.mxu1 %v3167_v38  ;;  %2442 = vmatprep.subr.bf16.mxu0 %v3169_v39  ;;  %v489_v60 = vld [vmem:[%s4035_s1 + $0x1d0] sm:$0xff]  ;;  %v490_v61 = vld [vmem:[%s4035_s1 + $0x1d8] sm:$0xff]  ;;  %v3251_v1 = vpack.c.bf16 %v472_v57, %v471_v55  ;;  %v3253_v2 = vpack.c.bf16 %v458_v59, %v457_v58  ;;  %v459_v6 = vld [vmem:[%s4035_s1 + $0xe0] sm:$0xff] }
  0x1f   : > { %2474 = vmatprep.subr.bf16.mxu1 %v3181_v43  ;;  %v441_v63 = vld [vmem:[%s4035_s1 + $0x50] sm:$0xff]  ;;  %v442_v0 = vld [vmem:[%s4035_s1 + $0x58] sm:$0xff]  ;;  %v3265_v9 = vpack.c.bf16 %v490_v61, %v489_v60  ;;  %v460_v10 = vld [vmem:[%s4035_s1 + $0xe8] sm:$0xff] }
  0x20   : > { %v473_v4 = vld [vmem:[%s4035_s1 + $0x150] sm:$0xff]  ;;  %v474_v5 = vld [vmem:[%s4035_s1 + $0x158] sm:$0xff]  ;;  %v491_v11 = vld [vmem:[%s4035_s1 + $0x1e0] sm:$0xff]  ;;  %v3291_v19 = vpack.c.bf16 %v442_v0, %v441_v63  ;;  %v3306_v27 = vpack.c.bf16 %v460_v10, %v459_v6 }
  0x21   : > { %2444 = vmatpush3.bf16.msra.mxu0 %v3202_v50  ;;  %v492_v13 = vld [vmem:[%s4035_s1 + $0x1e8] sm:$0xff]  ;;  %v443_v14 = vld [vmem:[%s4035_s1 + $0x60] sm:$0xff]  ;;  %v461_v22 = vld [vmem:[%s4035_s1 + $0xf0] sm:$0xff]  ;;  %v3304_v24 = vpack.c.bf16 %v474_v5, %v473_v4 }
  0x22   : > { %2476 = vmatpush3.bf16.msra.mxu1 %v3208_v51  ;;  %2446 = vmatprep.subr.bf16.mxu0 %v3210_v52  ;;  %v444_v15 = vld [vmem:[%s4035_s1 + $0x68] sm:$0xff]  ;;  %v475_v18 = vld [vmem:[%s4035_s1 + $0x160] sm:$0xff]  ;;  %v462_v23 = vld [vmem:[%s4035_s1 + $0xf8] sm:$0xff]  ;;  %v3317_v33 = vpack.c.bf16 %v492_v13, %v491_v11 }
  0x23   : > { %2478 = vmatprep.subr.bf16.mxu1 %v3222_v56  ;;  %v476_v20 = vld [vmem:[%s4035_s1 + $0x168] sm:$0xff]  ;;  %v493_v28 = vld [vmem:[%s4035_s1 + $0x1f0] sm:$0xff]  ;;  %v494_v29 = vld [vmem:[%s4035_s1 + $0x1f8] sm:$0xff]  ;;  %v3326_v46 = vpack.c.bf16 %v444_v15, %v443_v14  ;;  %v3335_v57 = vpack.c.bf16 %v462_v23, %v461_v22 }
  0x24   : > { %v332_v31 = vld [vmem:[%s3279_s19 + $0x8] sm:$0xff]  ;;  %v334_v37 = vld [vmem:[%s3279_s19 + $0x18] sm:$0xff]  ;;  %v331_v44 = vld [vmem:[%s3279_s19] sm:$0xff]  ;;  %v3328_v47 = vpack.c.bf16 %v476_v20, %v475_v18  ;;  %v3345_v0 = vpack.c.bf16 %v494_v29, %v493_v28 }
  0x25   : > { %2448 = vmatpush3.bf16.msra.mxu0 %v3241_v62  ;;  %v336_v32 = vld [vmem:[%s3279_s19 + $0x28] sm:$0xff]  ;;  %v338_v40 = vld [vmem:[%s3279_s19 + $0x38] sm:$0xff]  ;;  %v335_v45 = vld [vmem:[%s3279_s19 + $0x20] sm:$0xff] }
  0x26   : > { %2480 = vmatpush3.bf16.msra.mxu1 %v3251_v1  ;;  %2450 = vmatprep.subr.bf16.mxu0 %v3253_v2  ;;  %v340_v35 = vadd.f32 %v336_v32, %v332_v31  ;;  %v344_v36 = vld [vmem:[%s3279_s19 + $0x48] sm:$0xff]  ;;  %v342_v41 = vadd.f32 %v338_v40, %v334_v37  ;;  %v346_v42 = vld [vmem:[%s3279_s19 + $0x58] sm:$0xff]  ;;  %v339_v49 = vadd.f32 %v335_v45, %v331_v44  ;;  %v343_v53 = vld [vmem:[%s3279_s19 + $0x40] sm:$0xff] }
  0x27   : > { %2482 = vmatprep.subr.bf16.mxu1 %v3265_v9  ;;  %v333_v54 = vld [vmem:[%s3279_s19 + $0x10] sm:$0xff]  ;;  %v446_v59 = vld [vmem:[%s4035_s1 + $0x78] sm:$0xff]  ;;  %vm3375_vm1 = vmpackc.low %vm713_vm0, %vm713_vm0 }
  0x28   : > { %v348_v48 = vadd.f32 %v344_v36, %v340_v35  ;;  %v337_v55 = vld [vmem:[%s3279_s19 + $0x30] sm:$0xff]  ;;  %v350_v60 = vadd.f32 %v346_v42, %v342_v41  ;;  %v478_v5 = vld [vmem:[%s4035_s1 + $0x178] sm:$0xff]  ;;  %v347_v10 = vadd.f32 %v343_v53, %v339_v49  ;;  %v511_v32 = vld [vmem:[%s4036_s2 + $0x80] sm:$0xff] }
  0x29   : > { %2452 = vmatpush3.bf16.msra.mxu0 %v3291_v19  ;;  %v445_v58 = vld [vmem:[%s4035_s1 + $0x70] sm:$0xff]  ;;  %v341_v61 = vadd.f32 %v337_v55, %v333_v54  ;;  %v512_v35 = vld [vmem:[%s4036_s2 + $0x88] sm:$0xff]  ;;  %v543_v36 = vld [vmem:[%s4036_s2 + $0x180] sm:$0xff] }
  0x2a   : > { %2484 = vmatpush3.bf16.msra.mxu1 %v3304_v24  ;;  %2454 = vmatprep.subr.bf16.mxu0 %v3306_v27  ;;  %v345_v63 = vld [vmem:[%s3279_s19 + $0x50] sm:$0xff]  ;;  %v3353_v6 = vmul.f32 0.33333334, %v348_v48  ;;  %v3355_v11 = vmul.f32 0.33333334, %v350_v60  ;;  %v3358_v14 = vpack.c.bf16 %v446_v59, %v445_v58  ;;  %v3490_v37 = vpack.c.bf16 %v512_v35, %v511_v32  ;;  %v544_v40 = vld [vmem:[%s4036_s2 + $0x188] sm:$0xff] }
  0x2b   : > { %2486 = vmatprep.subr.bf16.mxu1 %v3317_v33  ;;  %v477_v4 = vld [vmem:[%s4035_s1 + $0x170] sm:$0xff]  ;;  %v349_v13 = vadd.f32 %v345_v63, %v341_v61  ;;  %v3362_v18 = vmul.f32 0.33333334, %v347_v10  ;;  %v3495_v41 = vpack.c.bf16 %v544_v40, %v543_v36  ;;  %v495_v58 = vld [vmem:[%s4036_s2] sm:$0xff]  ;;  %v496_v59 = vld [vmem:[%s4036_s2 + $0x8] sm:$0xff]  ;;  %s1868_s19 = sshll.u32 %s4149_s21, 1 }
  0x2c   : > { %v568_v15 = vmul.f32 %v3353_v6, %v3353_v6  ;;  %v3366_v20 = vpack.c.bf16 %v478_v5, %v477_v4  ;;  %v570_v22 = vmul.f32 %v3355_v11, %v3355_v11  ;;  %v527_v60 = vld [vmem:[%s4036_s2 + $0x100] sm:$0xff]  ;;  %v528_v61 = vld [vmem:[%s4036_s2 + $0x108] sm:$0xff]  ;;  %v513_v63 = vld [vmem:[%s4036_s2 + $0x90] sm:$0xff]  ;;  %s316_s17 = sadd.s32 %s1868_s19, %s4151_s20 }
  0x2d   : > { %2456 = vmatpush3.bf16.msra.mxu0 %v3326_v46  ;;  %v3370_v23 = vmul.f32 0.33333334, %v349_v13  ;;  %v567_v29 = vmul.f32 %v3362_v18, %v3362_v18  ;;  %4075 = vst [vmem:[#allocation7_spill] sm:$0xff] %v3495_v41  ;;  %v514_v4 = vld [vmem:[%s4036_s2 + $0x98] sm:$0xff]  ;;  %v545_v5 = vld [vmem:[%s4036_s2 + $0x190] sm:$0xff]  ;;  %v3523_v13 = vpack.c.bf16 %v496_v59, %v495_v58  ;;  %s1869_s11 = sshll.u32 %s316_s17, 3 }
  0x2e   : > { %2488 = vmatpush3.bf16.msra.mxu1 %v3328_v47  ;;  %2458 = vmatprep.subr.bf16.mxu0 %v3335_v57  ;;  %v546_v10 = vld [vmem:[%s4036_s2 + $0x198] sm:$0xff]  ;;  %v3533_v32 = vpack.c.bf16 %v514_v4, %v513_v63  ;;  %v529_v36 = vld [vmem:[%s4036_s2 + $0x110] sm:$0xff]  ;;  %s318_s8 = scalar_lea.vmem %s4039_s5, %s1869_s11 }
  0x2f   : > { %2490 = vmatprep.subr.bf16.mxu1 %v3345_v0  ;;  %635 = vmatprep.mubr.f32.mxu0 %v568_v15  ;;  %v569_v31 = vmul.f32 %v3370_v23, %v3370_v23  ;;  %4076 = vst [vmem:[#allocation8_spill] sm:$0xff] %v3523_v13  ;;  %v3525_v15 = vpack.c.bf16 %v528_v61, %v527_v60  ;;  %v530_v40 = vld [vmem:[%s4036_s2 + $0x118] sm:$0xff]  ;;  %v531_v60 = vld [vmem:[%s4036_s2 + $0x120] sm:$0xff]  ;;  %v532_v61 = vld [vmem:[%s4036_s2 + $0x128] sm:$0xff] }
  0x30   : > { %705 = vmatprep.mubr.f32.mxu1 %v570_v22  ;;  %v497_v22 = vld [vmem:[%s4036_s2 + $0x10] sm:$0xff]  ;;  %4078 = vst [vmem:[#allocation10_spill] sm:$0xff] %v3533_v32  ;;  %v3535_v35 = vpack.c.bf16 %v546_v10, %v545_v5  ;;  %v518_v4 = vld [vmem:[%s4036_s2 + $0xb8] sm:$0xff] }
  0x31   : > { %2460 = vmatpush3.bf16.msra.mxu0 %v3358_v14  ;;  %4077 = vst [vmem:[#allocation9_spill] sm:$0xff] %v3525_v15  ;;  %v517_v63 = vld [vmem:[%s4036_s2 + $0xb0] sm:$0xff]  ;;  %v550_v10 = vld [vmem:[%s4036_s2 + $0x1b8] sm:$0xff] }
  0x32   : > { %2492 = vmatpush3.bf16.msra.mxu1 %v3366_v20  ;;  %2495 = vmatprep.subr.msk.bf16.mxu0 %vm3375_vm1, %v3052_v3  ;;  %4079 = vst [vmem:[#allocation11_spill] sm:$0xff] %v3535_v35  ;;  %v549_v5 = vld [vmem:[%s4036_s2 + $0x1b0] sm:$0xff] }
  0x33   : > { %2543 = vmatprep.subr.msk.bf16.mxu1 %vm3375_vm1, %v3063_v7 }
  0x34   : > { %636 = vmatmul.mubr.f32.vlgmr.msra.gmra.mrb[0].mxu0 %v567_v29  ;;  %v498_v29 = vld [vmem:[%s4036_s2 + $0x18] sm:$0xff] }
  0x35   : > { %706 = vmatmul.mubr.f32.vlgmr.msra.gmra.mrb[0].mxu1 %v569_v31 }
  0x3a   : > { %2498 = vmatpush3.bf16.xpose.msk.msra.mxu0 %vm3375_vm1, %v3065_v8 }
  0x3b   : > { %2546 = vmatpush3.bf16.xpose.msk.msra.mxu1 %vm3375_vm1, %v3077_v12  ;;  %2501 = vmatprep.subr.msk.bf16.mxu0 %vm3375_vm1, %v3095_v16 }
  0x3c   : > { %2549 = vmatprep.subr.msk.bf16.mxu1 %vm3375_vm1, %v3097_v17 }
  0x42   : > { %2504 = vmatpush3.bf16.xpose.msk.msra.mxu0 %vm3375_vm1, %v3114_v21 }
  0x43   : > { %2552 = vmatpush3.bf16.xpose.msk.msra.mxu1 %vm3375_vm1, %v3127_v25  ;;  %2507 = vmatprep.subr.msk.bf16.mxu0 %vm3375_vm1, %v3129_v26 }
  0x44   : > { %2555 = vmatprep.subr.msk.bf16.mxu1 %vm3375_vm1, %v3140_v30 }
  0x4a   : > { %2510 = vmatpush3.bf16.xpose.msk.msra.mxu0 %vm3375_vm1, %v3153_v34 }
  0x4b   : > { %2558 = vmatpush3.bf16.xpose.msk.msra.mxu1 %vm3375_vm1, %v3167_v38  ;;  %2513 = vmatprep.subr.msk.bf16.mxu0 %vm3375_vm1, %v3169_v39 }
  0x4c   : > { %2561 = vmatprep.subr.msk.bf16.mxu1 %vm3375_vm1, %v3181_v43 }
  0x52   : > { %2516 = vmatpush3.bf16.xpose.msk.msra.mxu0 %vm3375_vm1, %v3202_v50 }
  0x53   : > { %2564 = vmatpush3.bf16.xpose.msk.msra.mxu1 %vm3375_vm1, %v3208_v51  ;;  %2519 = vmatprep.subr.msk.bf16.mxu0 %vm3375_vm1, %v3210_v52 }
  0x54   : > { %2567 = vmatprep.subr.msk.bf16.mxu1 %vm3375_vm1, %v3222_v56 }
  0x5a   : > { %2522 = vmatpush3.bf16.xpose.msk.msra.mxu0 %vm3375_vm1, %v3241_v62 }
  0x5b   : > { %2570 = vmatpush3.bf16.xpose.msk.msra.mxu1 %vm3375_vm1, %v3251_v1  ;;  %2525 = vmatprep.subr.msk.bf16.mxu0 %vm3375_vm1, %v3253_v2 }
  0x5c   : > { %2573 = vmatprep.subr.msk.bf16.mxu1 %vm3375_vm1, %v3265_v9 }
  0x62   : > { %2528 = vmatpush3.bf16.xpose.msk.msra.mxu0 %vm3375_vm1, %v3291_v19 }
  0x63   : > { %2576 = vmatpush3.bf16.xpose.msk.msra.mxu1 %vm3375_vm1, %v3304_v24  ;;  %2531 = vmatprep.subr.msk.bf16.mxu0 %vm3375_vm1, %v3306_v27 }
  0x64   : > { %2579 = vmatprep.subr.msk.bf16.mxu1 %vm3375_vm1, %v3317_v33 }
  0x6a   : > { %2534 = vmatpush3.bf16.xpose.msk.msra.mxu0 %vm3375_vm1, %v3326_v46 }
  0x6b   : > { %2582 = vmatpush3.bf16.xpose.msk.msra.mxu1 %vm3375_vm1, %v3328_v47  ;;  %2537 = vmatprep.subr.msk.bf16.mxu0 %vm3375_vm1, %v3335_v57 }
  0x6c   : > { %2585 = vmatprep.subr.msk.bf16.mxu1 %vm3375_vm1, %v3345_v0 }
  0x72   : > { %2540 = vmatpush3.bf16.xpose.msk.msra.mxu0 %vm3375_vm1, %v3358_v14 }
  0x73   : > { %2588 = vmatpush3.bf16.xpose.msk.msra.mxu1 %vm3375_vm1, %v3366_v20  ;;  %2590 = vmatprep.subr.bf16.mxu0 %v3490_v37 }
  0x74   : > { %2622 = vmatprep.subr.bf16.mxu1 %v3495_v41 }
 0x107   : > { %v2038_v42 = vpop.f32.mrb[0].mxu0 }
 0x108   : > { %v2073_v44 = vpop.f32.mrb[0].mxu1  ;;  %v2039_v45 = vpop.f32.mrb[1].mxu0 }
 0x109   : > { %v2040_v48 = vadd.f32 %v2039_v45, %v2038_v42  ;;  %v2074_v49 = vpop.f32.mrb[1].mxu1  ;;  %v515_v42 = vld [vmem:[%s4036_s2 + $0xa0] sm:$0xff] }
 0x10a   : > { %v2075_v53 = vadd.f32 %v2074_v49, %v2073_v44  ;;  %v516_v44 = vld [vmem:[%s4036_s2 + $0xa8] sm:$0xff]  ;;  %v547_v45 = vld [vmem:[%s4036_s2 + $0x1a0] sm:$0xff]  ;;  %v3561_v49 = vpack.c.bf16 %v498_v29, %v497_v22  ;;  %v3599_v29 = vpack.c.bf16 %v532_v61, %v531_v60 }
 0x10b   : > { %v3573_v58 = vpack.c.bf16 %v516_v44, %v515_v42  ;;  %v3611_v42 = vpack.c.bf16 %v550_v10, %v549_v5  ;;  %v533_v44 = vld [vmem:[%s4036_s2 + $0x130] sm:$0xff]  ;;  %v552_v60 = vld [vmem:[%s4036_s2 + $0x1c8] sm:$0xff] }
 0x10c   : > { %v708_v54 = vadd.f32 %v2075_v53, %v2040_v48  ;;  %v548_v48 = vld [vmem:[%s4036_s2 + $0x1a8] sm:$0xff]  ;;  %4080 = vst [vmem:[#allocation12_spill] sm:$0xff] %v3561_v49  ;;  %v3563_v53 = vpack.c.bf16 %v530_v40, %v529_v36  ;;  %4085 = vst [vmem:[#allocation17_spill] sm:$0xff] %v3599_v29  ;;  %v502_v36 = vld [vmem:[%s4036_s2 + $0x38] sm:$0xff]  ;;  %v3609_v40 = vpack.c.bf16 %v518_v4, %v517_v63 }
 0x10d   : > { %4082 = vst [vmem:[#allocation14_spill] sm:$0xff] %v3573_v58  ;;  %v3575_v59 = vpack.c.bf16 %v548_v48, %v547_v45  ;;  %4087 = vst [vmem:[#allocation19_spill] sm:$0xff] %v3611_v42  ;;  %v534_v45 = vld [vmem:[%s4036_s2 + $0x138] sm:$0xff]  ;;  %v519_v48 = vld [vmem:[%s4036_s2 + $0xc0] sm:$0xff] }
 0x10e   : > { %v711_v55 = vmax.f32 %v708_v54, 1e-24  ;;  %4081 = vst [vmem:[#allocation13_spill] sm:$0xff] %v3563_v53  ;;  %v499_v54 = vld [vmem:[%s4036_s2 + $0x20] sm:$0xff]  ;;  %4086 = vst [vmem:[#allocation18_spill] sm:$0xff] %v3609_v40  ;;  %v3635_v63 = vpack.c.bf16 %v534_v45, %v533_v44  ;;  %v504_v5 = vld [vmem:[%s4036_s2 + $0x48] sm:$0xff] }
 0x10f   : > { %4083 = vst [vmem:[#allocation15_spill] sm:$0xff] %v3575_v59  ;;  %v503_v4 = vld [vmem:[%s4036_s2 + $0x40] sm:$0xff]  ;;  %v521_v44 = vld [vmem:[%s4036_s2 + $0xd0] sm:$0xff]  ;;  %v522_v45 = vld [vmem:[%s4036_s2 + $0xd8] sm:$0xff] }
 0x110   : > { %2922 = vrsqrt.f32 %v711_v55  ;;  %v500_v55 = vld [vmem:[%s4036_s2 + $0x28] sm:$0xff]  ;;  %4089 = vst [vmem:[#allocation21_spill] sm:$0xff] %v3635_v63 }
 0x111   : > { %v3597_v22 = vpack.c.bf16 %v500_v55, %v499_v54  ;;  %v520_v54 = vld [vmem:[%s4036_s2 + $0xc8] sm:$0xff]  ;;  %v551_v55 = vld [vmem:[%s4036_s2 + $0x1c0] sm:$0xff] }
 0x112   : > { %v3645_v10 = vpack.c.bf16 %v520_v54, %v519_v48  ;;  %v553_v48 = vld [vmem:[%s4036_s2 + $0x1d0] sm:$0xff]  ;;  %v554_v54 = vld [vmem:[%s4036_s2 + $0x1d8] sm:$0xff] }
 0x113   : > { %4084 = vst [vmem:[#allocation16_spill] sm:$0xff] %v3597_v22 }
 0x114   : > { %4090 = vst [vmem:[#allocation22_spill] sm:$0xff] %v3645_v10  ;;  %v4118_v28 = vld [vmem:[#allocation19_spill] sm:$0xff] }
 0x11a   : > { %v2923_v31 = vpop.eup %2922 }
 0x11b   : > { %2108 = vmatprep.mubr.msk.f32.mxu0 %vm713_vm0, %v2923_v31  ;;  %2142 = vmatprep.mubr.msk.f32.mxu1 %vm713_vm0, %v2923_v31 }
 0x11c   : > { %2109 = vmatmul.mubr.msk.f32.vlgmr.msra.gmra.mrb[2].mxu0 %vm713_vm0, %v2923_v31  ;;  %2143 = vmatmul.mubr.msk.f32.vlgmr.msra.gmra.mrb[2].mxu1 %vm713_vm0, %v2923_v31  ;;  %v501_v31 = vld [vmem:[%s4036_s2 + $0x30] sm:$0xff] }
 0x11d   : > { %2592 = vmatpush3.bf16.msra.mxu0 %v3523_v13  ;;  %2624 = vmatpush3.bf16.msra.mxu1 %v3525_v15  ;;  %v3633_v61 = vpack.c.bf16 %v502_v36, %v501_v31  ;;  %v535_v31 = vld [vmem:[%s4036_s2 + $0x140] sm:$0xff]  ;;  %v536_v36 = vld [vmem:[%s4036_s2 + $0x148] sm:$0xff]  ;;  %v389_v13 = vld [vmem:[%s3779_s30 + $0x50] sm:$0x1f] }
 0x11e   : > { %2594 = vmatprep.subr.bf16.mxu0 %v3533_v32  ;;  %2626 = vmatprep.subr.bf16.mxu1 %v3535_v35 }
 0x11f   : > { %4088 = vst [vmem:[#allocation20_spill] sm:$0xff] %v3633_v61 }
 0x121   : > { %2596 = vmatpush3.bf16.msra.mxu0 %v3561_v49  ;;  %2628 = vmatpush3.bf16.msra.mxu1 %v3563_v53  ;;  %v375_v53 = vld [vmem:[%s3779_s30 + $0x80] sm:$0x1f] }
 0x122   : > { %2598 = vmatprep.subr.bf16.mxu0 %v3573_v58  ;;  %2630 = vmatprep.subr.bf16.mxu1 %v3575_v59 }
 0x125   : > { %2600 = vmatpush3.bf16.msra.mxu0 %v3597_v22  ;;  %2632 = vmatpush3.bf16.msra.mxu1 %v3599_v29  ;;  %v3647_v22 = vpack.c.bf16 %v552_v60, %v551_v55  ;;  %v3669_v55 = vpack.c.bf16 %v504_v5, %v503_v4  ;;  %v3671_v60 = vpack.c.bf16 %v536_v36, %v535_v31  ;;  %v537_v4 = vld [vmem:[%s4036_s2 + $0x150] sm:$0xff]  ;;  %v538_v5 = vld [vmem:[%s4036_s2 + $0x158] sm:$0xff]  ;;  %v523_v31 = vld [vmem:[%s4036_s2 + $0xe0] sm:$0xff] }
 0x126   : > { %2602 = vmatprep.subr.bf16.mxu0 %v3609_v40  ;;  %2634 = vmatprep.subr.bf16.mxu1 %v3611_v42  ;;  %v505_v42 = vld [vmem:[%s4036_s2 + $0x50] sm:$0xff]  ;;  %v506_v40 = vld [vmem:[%s4036_s2 + $0x58] sm:$0xff]  ;;  %v3681_v29 = vpack.c.bf16 %v522_v45, %v521_v44  ;;  %v524_v36 = vld [vmem:[%s4036_s2 + $0xe8] sm:$0xff] }
 0x127   : > { %4091 = vst [vmem:[#allocation23_spill] sm:$0xff] %v3647_v22  ;;  %4092 = vst [vmem:[#allocation24_spill] sm:$0xff] %v3669_v55  ;;  %v555_v44 = vld [vmem:[%s4036_s2 + $0x1e0] sm:$0xff]  ;;  %v556_v45 = vld [vmem:[%s4036_s2 + $0x1e8] sm:$0xff] }
 0x128   : > { %4093 = vst [vmem:[#allocation25_spill] sm:$0xff] %v3671_v60  ;;  %4094 = vst [vmem:[#allocation26_spill] sm:$0xff] %v3681_v29 }
 0x129   : > { %2604 = vmatpush3.bf16.msra.mxu0 %v3633_v61  ;;  %2636 = vmatpush3.bf16.msra.mxu1 %v3635_v63  ;;  %v3683_v61 = vpack.c.bf16 %v554_v54, %v553_v48  ;;  %v3705_v48 = vpack.c.bf16 %v506_v40, %v505_v42  ;;  %v3707_v54 = vpack.c.bf16 %v538_v5, %v537_v4  ;;  %v539_v40 = vld [vmem:[%s4036_s2 + $0x160] sm:$0xff]  ;;  %v540_v42 = vld [vmem:[%s4036_s2 + $0x168] sm:$0xff] }
 0x12a   : > { %2606 = vmatprep.subr.bf16.mxu0 %v3645_v10  ;;  %2638 = vmatprep.subr.bf16.mxu1 %v3647_v22  ;;  %v507_v22 = vld [vmem:[%s4036_s2 + $0x60] sm:$0xff]  ;;  %v3714_v10 = vpack.c.bf16 %v524_v36, %v523_v31  ;;  %v3716_v63 = vpack.c.bf16 %v556_v45, %v555_v44  ;;  %v3731_v5 = vpack.c.bf16 %v540_v42, %v539_v40  ;;  %v525_v31 = vld [vmem:[%s4036_s2 + $0xf0] sm:$0xff]  ;;  %v526_v36 = vld [vmem:[%s4036_s2 + $0xf8] sm:$0xff] }
 0x12b   : > { %4095 = vst [vmem:[#allocation27_spill] sm:$0xff] %v3683_v61  ;;  %4096 = vst [vmem:[#allocation28_spill] sm:$0xff] %v3705_v48  ;;  %v558_v44 = vld [vmem:[%s4036_s2 + $0x1f8] sm:$0xff]  ;;  %v509_v45 = vld [vmem:[%s4036_s2 + $0x70] sm:$0xff] }
 0x12c   : > { %4097 = vst [vmem:[#allocation29_spill] sm:$0xff] %v3707_v54  ;;  %4098 = vst [vmem:[#allocation30_spill] sm:$0xff] %v3714_v10  ;;  %v510_v40 = vld [vmem:[%s4036_s2 + $0x78] sm:$0xff] }
 0x12d   : > { %2608 = vmatpush3.bf16.msra.mxu0 %v3669_v55  ;;  %2640 = vmatpush3.bf16.msra.mxu1 %v3671_v60  ;;  %4099 = vst [vmem:[#allocation31_spill] sm:$0xff] %v3716_v63  ;;  %v508_v60 = vld [vmem:[%s4036_s2 + $0x68] sm:$0xff]  ;;  %4101 = vst [vmem:[#allocation33_spill] sm:$0xff] %v3731_v5  ;;  %v394_v55 = vld [vmem:[%s3779_s30 + $0xb8] sm:$0x1f] }
 0x12e   : > { %2610 = vmatprep.subr.bf16.mxu0 %v3681_v29  ;;  %2642 = vmatprep.subr.bf16.mxu1 %v3683_v61  ;;  %v3729_v4 = vpack.c.bf16 %v508_v60, %v507_v22  ;;  %v557_v22 = vld [vmem:[%s4036_s2 + $0x1f0] sm:$0xff]  ;;  %v3746_v60 = vpack.c.bf16 %v526_v36, %v525_v31  ;;  %v542_v36 = vld [vmem:[%s4036_s2 + $0x178] sm:$0xff] }
 0x12f   : > { %v3757_v42 = vpack.c.bf16 %v558_v44, %v557_v22  ;;  %v541_v31 = vld [vmem:[%s4036_s2 + $0x170] sm:$0xff]  ;;  %v4062_v22 = vmov 0.0   ;;  %v364_v44 = vld [vmem:[%s3779_s30 + $0x8] sm:$0x1f]  ;;  %v390_v29 = vld [vmem:[%s3779_s30 + $0x58] sm:$0x1f] }
 0x130   : > { %4100 = vst [vmem:[#allocation32_spill] sm:$0xff] %v3729_v4  ;;  %4102 = vst [vmem:[#allocation34_spill] sm:$0xff] %v3746_v60 }
 0x131   : > { %2612 = vmatpush3.bf16.msra.mxu0 %v3705_v48  ;;  %2644 = vmatpush3.bf16.msra.mxu1 %v3707_v54  ;;  %4103 = vst [vmem:[#allocation35_spill] sm:$0xff] %v3757_v42  ;;  %328 = vst [vmem:[#allocation3 + $0x8] sm:$0x1f] %v4062_v22  ;;  %v378_v48 = vld [vmem:[%s3779_s30 + $0x98] sm:$0x1f] }
 0x132   : > { %2614 = vmatprep.subr.bf16.mxu0 %v3714_v10  ;;  %2646 = vmatprep.subr.bf16.mxu1 %v3716_v63  ;;  %327 = vst [vmem:[#allocation3] sm:$0x1f] %v4062_v22  ;;  %329 = vst [vmem:[#allocation3 + $0x10] sm:$0x1f] %v4062_v22  ;;  %v392_v63 = vld [vmem:[%s3779_s30 + $0xa8] sm:$0x1f] }
 0x133   : > { %330 = vst [vmem:[#allocation3 + $0x18] sm:$0x1f] %v4062_v22  ;;  %v374_v10 = vld [vmem:[%s3779_s30 + $0x38] sm:$0x1f] }
 0x135   : > { %2616 = vmatpush3.bf16.msra.mxu0 %v3729_v4  ;;  %2648 = vmatpush3.bf16.msra.mxu1 %v3731_v5  ;;  %v3759_v5 = vpack.c.bf16 %v510_v40, %v509_v45  ;;  %v3768_v4 = vpack.c.bf16 %v542_v36, %v541_v31  ;;  %v368_v45 = vld [vmem:[%s3779_s30 + $0x68] sm:$0x1f] }
 0x136   : > { %2618 = vmatprep.subr.bf16.mxu0 %v3746_v60  ;;  %2650 = vmatprep.subr.bf16.mxu1 %v3757_v42  ;;  %v372_v40 = vld [vmem:[%s3779_s30 + $0x28] sm:$0x1f] }
 0x137   : > { %4104 = vst [vmem:[#allocation36_spill] sm:$0xff] %v3759_v5  ;;  %4105 = vst [vmem:[#allocation37_spill] sm:$0xff] %v3768_v4  ;;  %v376_v31 = vld [vmem:[%s3779_s30 + $0x88] sm:$0x1f]  ;;  %v380_v36 = vadd.f32 %v372_v40, %v364_v44  ;;  %v363_v44 = vld [vmem:[%s3779_s30] sm:$0x1f] }
 0x138   : > { %v384_v42 = vadd.f32 %v376_v31, %v368_v45  ;;  %v388_v60 = vld [vmem:[%s3779_s30 + $0x48] sm:$0x1f]  ;;  %v367_v40 = vld [vmem:[%s3779_s30 + $0x60] sm:$0x1f] }
 0x139   : > { %2620 = vmatpush3.bf16.msra.mxu0 %v3759_v5  ;;  %2652 = vmatpush3.bf16.msra.mxu1 %v3768_v4  ;;  %v366_v4 = vld [vmem:[%s3779_s30 + $0x18] sm:$0x1f]  ;;  %v396_v54 = vadd.f32 %v388_v60, %v380_v36  ;;  %v371_v31 = vld [vmem:[%s3779_s30 + $0x20] sm:$0x1f] }
 0x13a   : > { %2654 = vmatprep.subr.bf16.mxu0 %v3052_v3  ;;  %2686 = vmatprep.subr.bf16.mxu1 %v3063_v7  ;;  %v370_v5 = vld [vmem:[%s3779_s30 + $0x78] sm:$0x1f]  ;;  %v382_v61 = vadd.f32 %v374_v10, %v366_v4  ;;  %v400_v22 = vadd.f32 %v392_v63, %v384_v42  ;;  %v379_v10 = vadd.f32 %v371_v31, %v363_v44  ;;  %v387_v36 = vld [vmem:[%s3779_s30 + $0x40] sm:$0x1f]  ;;  %v404_v42 = vld [vmem:[#allocation3 + $0x8] sm:$0x1f] }
 0x13b   : > { %v386_v59 = vadd.f32 %v378_v48, %v370_v5  ;;  %v411_v58 = vsel %vm407_vm2, %v396_v54, 0.0  ;;  %v383_v4 = vadd.f32 %v375_v53, %v367_v40  ;;  %v391_v63 = vld [vmem:[%s3779_s30 + $0xa0] sm:$0x1f]  ;;  %v406_v5 = vld [vmem:[#allocation3 + $0x18] sm:$0x1f] }
 0x13c   : > { %v398_v45 = vadd.f32 %v390_v29, %v382_v61  ;;  %v412_v49 = vsel %vm407_vm2, %v400_v22, 0.0  ;;  %v395_v61 = vadd.f32 %v387_v36, %v379_v10  ;;  %v403_v22 = vld [vmem:[#allocation3] sm:$0x1f]  ;;  %v369_v31 = vld [vmem:[%s3779_s30 + $0x70] sm:$0x1f] }
 0x13d   : > { %v402_v60 = vadd.f32 %v394_v55, %v386_v59  ;;  %v413_v48 = vadd.f32 %v412_v49, %v411_v58  ;;  %v399_v35 = vadd.f32 %v391_v63, %v383_v4  ;;  %v365_v59 = vld [vmem:[%s3779_s30 + $0x10] sm:$0x1f] }
 0x13e   : > { %v417_v54 = vsel %vm407_vm2, %v398_v45, 0.0  ;;  %v373_v53 = vld [vmem:[%s3779_s30 + $0x30] sm:$0x1f]  ;;  %v408_v32 = vsel %vm407_vm2, %v395_v61, 0.0 }
 0x13f   : > { %v418_v29 = vsel %vm407_vm2, %v402_v60, 0.0  ;;  %v421_v55 = vadd.f32 %v413_v48, %v404_v42  ;;  %v377_v40 = vld [vmem:[%s3779_s30 + $0x90] sm:$0x1f]  ;;  %v409_v49 = vsel %vm407_vm2, %v399_v35, 0.0  ;;  %v381_v58 = vadd.f32 %v373_v53, %v365_v59 }
 0x140   : > { %v419_v44 = vadd.f32 %v418_v29, %v417_v54  ;;  %v385_v15 = vadd.f32 %v377_v40, %v369_v31  ;;  %v393_v45 = vld [vmem:[%s3779_s30 + $0xb0] sm:$0x1f]  ;;  %v410_v60 = vadd.f32 %v409_v49, %v408_v32 }
 0x141   : > { %425 = vst [vmem:[#allocation3 + $0x8] sm:$0x1f] %v421_v55  ;;  %v397_v10 = vadd.f32 %v389_v13, %v381_v58  ;;  %v405_v63 = vld [vmem:[#allocation3 + $0x10] sm:$0x1f] }
 0x142   : > { %v423_v41 = vadd.f32 %v419_v44, %v406_v5  ;;  %v401_v4 = vadd.f32 %v393_v45, %v385_v15  ;;  %v420_v36 = vadd.f32 %v410_v60, %v403_v22  ;;  %v4120_v45 = vld [vmem:[#allocation21_spill] sm:$0xff]  ;;  %v4121_v60 = vld [vmem:[#allocation22_spill] sm:$0xff] }
 0x143   : > { %v414_v42 = vsel %vm407_vm2, %v397_v10, 0.0  ;;  %v4122_v10 = vld [vmem:[#allocation23_spill] sm:$0xff] }
 0x144   : > { %427 = vst [vmem:[#allocation3 + $0x18] sm:$0x1f] %v423_v41  ;;  %v415_v48 = vsel %vm407_vm2, %v401_v4, 0.0  ;;  %424 = vst [vmem:[#allocation3] sm:$0x1f] %v420_v36  ;;  %v4123_v4 = vld [vmem:[#allocation24_spill] sm:$0xff] }
 0x145   : > { %v416_v54 = vadd.f32 %v415_v48, %v414_v42  ;;  %v4124_v36 = vld [vmem:[#allocation25_spill] sm:$0xff]  ;;  %v4126_v42 = vld [vmem:[#allocation27_spill] sm:$0xff]  ;;  %v4127_v48 = vld [vmem:[#allocation28_spill] sm:$0xff] }
 0x147   : > { %v422_v29 = vadd.f32 %v416_v54, %v405_v63  ;;  %v4125_v63 = vld [vmem:[#allocation26_spill] sm:$0xff]  ;;  %v4128_v54 = vld [vmem:[#allocation29_spill] sm:$0xff] }
 0x148   : > { %v1199_v35 = vld [vmem:[#allocation3 + $0x8] sm:$0x1f] }
 0x149   : > { %426 = vst [vmem:[#allocation3 + $0x10] sm:$0x1f] %v422_v29  ;;  %v3817_v55 = vmul.f32 0.16666667, %v1199_v35  ;;  %v4129_v29 = vld [vmem:[#allocation30_spill] sm:$0xff]  ;;  %v4130_v35 = vld [vmem:[#allocation31_spill] sm:$0xff] }
 0x14b   : > { %v1201_v61 = vld [vmem:[#allocation3 + $0x18] sm:$0x1f]  ;;  %v1207_v53 = vmul.f32 %v3817_v55, %v3817_v55 }
 0x14c   : > { %v3819_v32 = vmul.f32 0.16666667, %v1201_v61  ;;  %v4131_v61 = vld [vmem:[#allocation32_spill] sm:$0xff] }
 0x14e   : > { %v1209_v40 = vmul.f32 %v3819_v32, %v3819_v32 }
 0x1ef   : > { %v975_v59 = vpop.f32.mrb[2].mxu0  ;;  %v1046_v31 = vpop.f32.mrb[2].mxu1 }
 0x1f0   : > { %v977_v13 = vpop.f32.mrb[3].mxu0  ;;  %v1048_v41 = vpop.f32.mrb[3].mxu1  ;;  %v1051_v22 = vmul.f32 %v975_v59, %v3362_v18  ;;  %v1053_v44 = vmul.f32 %v1046_v31, %v3370_v23  ;;  %v4132_v59 = vld [vmem:[#allocation33_spill] sm:$0xff]  ;;  %v4133_v31 = vld [vmem:[#allocation34_spill] sm:$0xff] }
 0x1f1   : > { %v1052_v15 = vmul.f32 %v977_v13, %v3353_v6  ;;  %v1054_v5 = vmul.f32 %v1048_v41, %v3355_v11  ;;  %v1198_v6 = vld [vmem:[#allocation3] sm:$0x1f]  ;;  %v1200_v11 = vld [vmem:[#allocation3 + $0x10] sm:$0x1f]  ;;  %v4135_v41 = vld [vmem:[#allocation36_spill] sm:$0xff] }
 0x1f2   : > { %v3853_v18 = vmul.f32 0.16666667, %v1198_v6  ;;  %v3855_v23 = vmul.f32 0.16666667, %v1200_v11  ;;  %v4134_v13 = vld [vmem:[#allocation35_spill] sm:$0xff] }
 0x1f3   : > { %1119 = vmatprep.mubr.f32.mxu0 %v1052_v15  ;;  %1189 = vmatprep.mubr.f32.mxu1 %v1054_v5  ;;  %v4136_v15 = vld [vmem:[#allocation37_spill] sm:$0xff]  ;;  %v4137_v5 = vmov 0.0  }
 0x1f4   : > { %1120 = vmatmul.mubr.f32.vlgmr.msra.gmra.mrb[4].mxu0 %v1051_v22  ;;  %1190 = vmatmul.mubr.f32.vlgmr.msra.gmra.mrb[4].mxu1 %v1053_v44  ;;  %v1206_v49 = vmul.f32 %v3853_v18, %v3853_v18  ;;  %v1208_v58 = vmul.f32 %v3855_v23, %v3855_v23 }
 0x1f5   : > { %2656 = vmatpush3.bf16.msra.mxu0 %v3065_v8  ;;  %2688 = vmatpush3.bf16.msra.mxu1 %v3077_v12 }
 0x1f6   : > { %2658 = vmatprep.subr.bf16.mxu0 %v3095_v16  ;;  %2690 = vmatprep.subr.bf16.mxu1 %v3097_v17 }
 0x1f7   : > { %1274 = vmatprep.mubr.f32.mxu0 %v1207_v53  ;;  %1344 = vmatprep.mubr.f32.mxu1 %v1209_v40 }
 0x1f9   : > { %2660 = vmatpush3.bf16.msra.mxu0 %v3114_v21  ;;  %2692 = vmatpush3.bf16.msra.mxu1 %v3127_v25 }
 0x1fa   : > { %2662 = vmatprep.subr.bf16.mxu0 %v3129_v26  ;;  %2694 = vmatprep.subr.bf16.mxu1 %v3140_v30 }
 0x1fd   : > { %2664 = vmatpush3.bf16.msra.mxu0 %v3153_v34  ;;  %2696 = vmatpush3.bf16.msra.mxu1 %v3167_v38 }
 0x1fe   : > { %2666 = vmatprep.subr.bf16.mxu0 %v3169_v39  ;;  %2698 = vmatprep.subr.bf16.mxu1 %v3181_v43 }
 0x201   : > { %2668 = vmatpush3.bf16.msra.mxu0 %v3202_v50  ;;  %2700 = vmatpush3.bf16.msra.mxu1 %v3208_v51 }
 0x202   : > { %2670 = vmatprep.subr.bf16.mxu0 %v3210_v52  ;;  %2702 = vmatprep.subr.bf16.mxu1 %v3222_v56 }
 0x205   : > { %2672 = vmatpush3.bf16.msra.mxu0 %v3241_v62  ;;  %2704 = vmatpush3.bf16.msra.mxu1 %v3251_v1 }
 0x206   : > { %2674 = vmatprep.subr.bf16.mxu0 %v3253_v2  ;;  %2706 = vmatprep.subr.bf16.mxu1 %v3265_v9 }
 0x209   : > { %2676 = vmatpush3.bf16.msra.mxu0 %v3291_v19  ;;  %2708 = vmatpush3.bf16.msra.mxu1 %v3304_v24 }
 0x20a   : > { %2678 = vmatprep.subr.bf16.mxu0 %v3306_v27  ;;  %2710 = vmatprep.subr.bf16.mxu1 %v3317_v33 }
 0x20d   : > { %2680 = vmatpush3.bf16.msra.mxu0 %v3326_v46  ;;  %2712 = vmatpush3.bf16.msra.mxu1 %v3328_v47 }
 0x20e   : > { %2682 = vmatprep.subr.bf16.mxu0 %v3335_v57  ;;  %2714 = vmatprep.subr.bf16.mxu1 %v3345_v0 }
 0x211   : > { %2684 = vmatpush3.bf16.msra.mxu0 %v3358_v14  ;;  %2716 = vmatpush3.bf16.msra.mxu1 %v3366_v20 }
 0x212   : > { %2719 = vmatprep.subr.msk.bf16.mxu0 %vm3375_vm1, %v3052_v3  ;;  %2767 = vmatprep.subr.msk.bf16.mxu1 %vm3375_vm1, %v3063_v7  ;;  %v4106_v3 = vld [vmem:[#allocation7_spill] sm:$0xff] }
 0x214   : > { %1275 = vmatmul.mubr.f32.vlgmr.msra.gmra.mrb[6].mxu0 %v1206_v49  ;;  %1345 = vmatmul.mubr.f32.vlgmr.msra.gmra.mrb[6].mxu1 %v1208_v58 }
 0x21a   : > { %2722 = vmatpush3.bf16.xpose.msk.msra.mxu0 %vm3375_vm1, %v3065_v8  ;;  %2770 = vmatpush3.bf16.xpose.msk.msra.mxu1 %vm3375_vm1, %v3077_v12 }
 0x21b   : > { %2725 = vmatprep.subr.msk.bf16.mxu0 %vm3375_vm1, %v3095_v16  ;;  %2773 = vmatprep.subr.msk.bf16.mxu1 %vm3375_vm1, %v3097_v17 }
 0x222   : > { %2728 = vmatpush3.bf16.xpose.msk.msra.mxu0 %vm3375_vm1, %v3114_v21  ;;  %2776 = vmatpush3.bf16.xpose.msk.msra.mxu1 %vm3375_vm1, %v3127_v25 }
 0x223   : > { %2731 = vmatprep.subr.msk.bf16.mxu0 %vm3375_vm1, %v3129_v26  ;;  %2779 = vmatprep.subr.msk.bf16.mxu1 %vm3375_vm1, %v3140_v30 }
 0x22a   : > { %2734 = vmatpush3.bf16.xpose.msk.msra.mxu0 %vm3375_vm1, %v3153_v34  ;;  %2782 = vmatpush3.bf16.xpose.msk.msra.mxu1 %vm3375_vm1, %v3167_v38 }
 0x22b   : > { %2737 = vmatprep.subr.msk.bf16.mxu0 %vm3375_vm1, %v3169_v39  ;;  %2785 = vmatprep.subr.msk.bf16.mxu1 %vm3375_vm1, %v3181_v43 }
 0x232   : > { %2740 = vmatpush3.bf16.xpose.msk.msra.mxu0 %vm3375_vm1, %v3202_v50  ;;  %2788 = vmatpush3.bf16.xpose.msk.msra.mxu1 %vm3375_vm1, %v3208_v51 }
 0x233   : > { %2743 = vmatprep.subr.msk.bf16.mxu0 %vm3375_vm1, %v3210_v52  ;;  %2791 = vmatprep.subr.msk.bf16.mxu1 %vm3375_vm1, %v3222_v56 }
 0x23a   : > { %2746 = vmatpush3.bf16.xpose.msk.msra.mxu0 %vm3375_vm1, %v3241_v62  ;;  %2794 = vmatpush3.bf16.xpose.msk.msra.mxu1 %vm3375_vm1, %v3251_v1 }
 0x23b   : > { %2749 = vmatprep.subr.msk.bf16.mxu0 %vm3375_vm1, %v3253_v2  ;;  %2797 = vmatprep.subr.msk.bf16.mxu1 %vm3375_vm1, %v3265_v9  ;;  %v4107_v9 = vld [vmem:[#allocation8_spill] sm:$0xff] }
 0x242   : > { %2752 = vmatpush3.bf16.xpose.msk.msra.mxu0 %vm3375_vm1, %v3291_v19  ;;  %2800 = vmatpush3.bf16.xpose.msk.msra.mxu1 %vm3375_vm1, %v3304_v24  ;;  %v4108_v19 = vld [vmem:[#allocation9_spill] sm:$0xff]  ;;  %v4109_v24 = vld [vmem:[#allocation10_spill] sm:$0xff] }
 0x243   : > { %2755 = vmatprep.subr.msk.bf16.mxu0 %vm3375_vm1, %v3306_v27  ;;  %2803 = vmatprep.subr.msk.bf16.mxu1 %vm3375_vm1, %v3317_v33  ;;  %v4110_v27 = vld [vmem:[#allocation11_spill] sm:$0xff]  ;;  %v4111_v33 = vld [vmem:[#allocation12_spill] sm:$0xff] }
 0x24a   : > { %2758 = vmatpush3.bf16.xpose.msk.msra.mxu0 %vm3375_vm1, %v3326_v46  ;;  %2806 = vmatpush3.bf16.xpose.msk.msra.mxu1 %vm3375_vm1, %v3328_v47  ;;  %v4112_v46 = vld [vmem:[#allocation13_spill] sm:$0xff]  ;;  %v4113_v47 = vld [vmem:[#allocation14_spill] sm:$0xff] }
 0x24b   : > { %2761 = vmatprep.subr.msk.bf16.mxu0 %vm3375_vm1, %v3335_v57  ;;  %2809 = vmatprep.subr.msk.bf16.mxu1 %vm3375_vm1, %v3345_v0  ;;  %v4114_v57 = vld [vmem:[#allocation15_spill] sm:$0xff]  ;;  %v4115_v0 = vld [vmem:[#allocation16_spill] sm:$0xff] }
 0x252   : > { %2764 = vmatpush3.bf16.xpose.msk.msra.mxu0 %vm3375_vm1, %v3358_v14  ;;  %2812 = vmatpush3.bf16.xpose.msk.msra.mxu1 %vm3375_vm1, %v3366_v20  ;;  %v4116_v14 = vld [vmem:[#allocation17_spill] sm:$0xff]  ;;  %v4117_v20 = vld [vmem:[#allocation18_spill] sm:$0xff] }
 0x253   : > { %2814 = vmatprep.subr.bf16.mxu0 %v3490_v37  ;;  %2846 = vmatprep.subr.bf16.mxu1 %v4106_v3  ;;  %v4119_v37 = vld [vmem:[#allocation20_spill] sm:$0xff] }
 0x2c7   : > { %v2176_v7 = vpop.f32.mrb[4].mxu0  ;;  %v2211_v8 = vpop.f32.mrb[4].mxu1 }
 0x2c8   : > { %v2177_v12 = vpop.f32.mrb[5].mxu0  ;;  %v2212_v16 = vpop.f32.mrb[5].mxu1 }
 0x2c9   : > { %v2178_v17 = vadd.f32 %v2177_v12, %v2176_v7  ;;  %v2213_v21 = vadd.f32 %v2212_v16, %v2211_v8 }
 0x2cb   : > { %v1192_v25 = vadd.f32 %v2213_v21, %v2178_v17 }
 0x2cd   : > { %v1195_v26 = vmul.f32 0.0625, %v1192_v25 }
 0x2cf   : > { %1197 = vst.msk [vmem:[#allocation4] sm:$0xff] %vm1196_vm3, %v1195_v26 }
 0x2d6   : > { %v3966_v30 = vld [vmem:[#allocation4] sm:$0xff] }
 0x2d7   : > { %v1654_v34 = vmul.f32 %v3966_v30, %v3966_v30 }
 0x2d9   : > { %v1655_v38 = vsel %vm1196_vm3, %v1654_v34, 0.0 }
 0x2da   : > { %1656 = vadd.xlane.f32.xlu1 %v1655_v38 }
 0x2e7   : > { %v2246_v39 = vpop.f32.mrb[6].mxu0  ;;  %v2281_v43 = vpop.f32.mrb[6].mxu1 }
 0x2e8   : > { %v2247_v50 = vpop.f32.mrb[7].mxu0  ;;  %v2282_v51 = vpop.f32.mrb[7].mxu1 }
 0x2e9   : > { %v2248_v52 = vadd.f32 %v2247_v50, %v2246_v39  ;;  %v2283_v56 = vadd.f32 %v2282_v51, %v2281_v43 }
 0x2eb   : > { %v1347_v62 = vadd.f32 %v2283_v56, %v2248_v52 }
 0x2ed   : > { %v1350_v1 = vmax.f32 %v1347_v62, 1e-24 }
 0x2ef   : > { %2924 = vrsqrt.f32 %v1350_v1 }
 0x2f9   : > { %v2925_v2 = vpop.eup %2924 }
 0x2fa   : > { %2316 = vmatprep.mubr.msk.f32.mxu0 %vm713_vm0, %v2925_v2  ;;  %2350 = vmatprep.mubr.msk.f32.mxu1 %vm713_vm0, %v2925_v2 }
 0x2fb   : > { %2317 = vmatmul.mubr.msk.f32.vlgmr.msra.gmra.mrb[8].mxu0 %vm713_vm0, %v2925_v2  ;;  %2351 = vmatmul.mubr.msk.f32.vlgmr.msra.gmra.mrb[8].mxu1 %vm713_vm0, %v2925_v2 }
 0x2fc   : > { %2816 = vmatpush3.bf16.msra.mxu0 %v4107_v9  ;;  %2848 = vmatpush3.bf16.msra.mxu1 %v4108_v19  ;;  %v1744_v19 = vstv %s1653_s6 }
 0x2fd   : > { %2818 = vmatprep.subr.bf16.mxu0 %v4109_v24  ;;  %2850 = vmatprep.subr.bf16.mxu1 %v4110_v27 }
 0x300   : > { %2820 = vmatpush3.bf16.msra.mxu0 %v4111_v33  ;;  %2852 = vmatpush3.bf16.msra.mxu1 %v4112_v46 }
 0x301   : > { %2822 = vmatprep.subr.bf16.mxu0 %v4113_v47  ;;  %2854 = vmatprep.subr.bf16.mxu1 %v4114_v57 }
 0x304   : > { %2824 = vmatpush3.bf16.msra.mxu0 %v4115_v0  ;;  %2856 = vmatpush3.bf16.msra.mxu1 %v4116_v14 }
 0x305   : > { %2826 = vmatprep.subr.bf16.mxu0 %v4117_v20  ;;  %2858 = vmatprep.subr.bf16.mxu1 %v4118_v28 }
 0x308   : > { %2828 = vmatpush3.bf16.msra.mxu0 %v4119_v37  ;;  %2860 = vmatpush3.bf16.msra.mxu1 %v4120_v45 }
 0x309   : > { %2830 = vmatprep.subr.bf16.mxu0 %v4121_v60  ;;  %2862 = vmatprep.subr.bf16.mxu1 %v4122_v10 }
 0x30c   : > { %2832 = vmatpush3.bf16.msra.mxu0 %v4123_v4  ;;  %2864 = vmatpush3.bf16.msra.mxu1 %v4124_v36 }
 0x30d   : > { %2834 = vmatprep.subr.bf16.mxu0 %v4125_v63  ;;  %2866 = vmatprep.subr.bf16.mxu1 %v4126_v42 }
 0x310   : > { %2836 = vmatpush3.bf16.msra.mxu0 %v4127_v48  ;;  %2868 = vmatpush3.bf16.msra.mxu1 %v4128_v54 }
 0x311   : > { %2838 = vmatprep.subr.bf16.mxu0 %v4129_v29  ;;  %2870 = vmatprep.subr.bf16.mxu1 %v4130_v35 }
 0x314   : > { %2840 = vmatpush3.bf16.msra.mxu0 %v4131_v61  ;;  %2872 = vmatpush3.bf16.msra.mxu1 %v4132_v59 }
 0x315   : > { %2842 = vmatprep.subr.bf16.mxu0 %v4133_v31  ;;  %2874 = vmatprep.subr.bf16.mxu1 %v4134_v13 }
 0x318   : > { %2844 = vmatpush3.bf16.msra.mxu0 %v4135_v41  ;;  %2876 = vmatpush3.bf16.msra.mxu1 %v4136_v15 }
 0x319   : > { %2424 = vmatprep.subr.mxu0 %v4137_v5 }
 0x367   : > { %v1657_v50 = vpop.xlane.xlu1 %1656 }
 0x368   : > { %v1658_v51 = vmax.f32 %v1657_v50, 1e-24 }
 0x3ce   : > { %v1421_v22 = vpop.f32.mrb[8].mxu0  ;;  %v1492_v44 = vpop.f32.mrb[8].mxu1 }
 0x3cf   : > { %v1423_v53 = vpop.f32.mrb[9].mxu0  ;;  %v1494_v40 = vpop.f32.mrb[9].mxu1  ;;  %v1497_v49 = vmul.f32 %v1421_v22, %v3853_v18  ;;  %v1499_v58 = vmul.f32 %v1492_v44, %v3855_v23 }
 0x3d0   : > { %v1498_v6 = vmul.f32 %v1423_v53, %v3817_v55  ;;  %v1500_v11 = vmul.f32 %v1494_v40, %v3819_v32 }
 0x3d2   : > { %1565 = vmatprep.mubr.f32.mxu0 %v1498_v6  ;;  %1635 = vmatprep.mubr.f32.mxu1 %v1500_v11 }
 0x3d3   : > { %1566 = vmatmul.mubr.f32.vlgmr.msra.gmra.mrb[10].mxu0 %v1497_v49  ;;  %1636 = vmatmul.mubr.f32.vlgmr.msra.gmra.mrb[10].mxu1 %v1499_v58 }
 0x3d4   : > { %2426 = vmatprep.mubr.msk.f32.mxu0 %vm2973_vm5, %v4137_v5 }
 0x4a6   : > { %v2384_v3 = vpop.f32.mrb[10].mxu0  ;;  %v2419_v7 = vpop.f32.mrb[10].mxu1 }
 0x4a7   : > { %v2385_v8 = vpop.f32.mrb[11].mxu0  ;;  %v2420_v12 = vpop.f32.mrb[11].mxu1 }
 0x4a8   : > { %v2386_v16 = vadd.f32 %v2385_v8, %v2384_v3  ;;  %v2421_v17 = vadd.f32 %v2420_v12, %v2419_v7 }
 0x4aa   : > { %v1638_v21 = vadd.f32 %v2421_v17, %v2386_v16 }
 0x4ac   : > { %v1641_v25 = vmul.f32 0.0625, %v1638_v21 }
 0x4ae   : > { %1643 = vst.msk [vmem:[#allocation5] sm:$0x1f] %vm1642_vm4, %v1641_v25 }
 0x4b5   : > { %v1645_v55 = vld [vmem:[#allocation5] sm:$0x1f] }
 0x4b6   : > { %v1646_v32 = vmul.f32 %v1645_v55, %v1645_v55 }
 0x4b8   : > { %v1647_v26 = vsel %vm1642_vm4, %v1646_v32, 0.0 }
 0x4b9   : > { %1648 = vadd.xlane.f32.xlu0 %v1647_v26 }
 0x546   : > { %v1649_v18 = vpop.xlane.xlu0 %1648 }
 0x547   : > { %v1650_v23 = vmax.f32 %v1649_v18, 1e-24 }
 0x549   : > { %2926 = vrsqrt.f32 %v1650_v23 }
 0x553   : > { %v2927_v34 = vpop.eup %2926 }
 0x554   : > { %v1652_v38 = vmul.f32 %v2927_v34, %v1645_v55 }
 0x556   : > { %v1661_v39 = vmul.f32 %v1652_v38, %v1652_v38 }
 0x558   : > { %v1662_v43 = vsel %vm1642_vm4, %v1661_v39, 0.0 }
 0x559   : > { %1663 = vadd.xlane.f32.xlu0 %v1662_v43 }
 0x5e6   : > { %v1664_v52 = vpop.xlane.xlu0 %1663 }
 0x5e7   : > { %v1665_v56 = vmax.f32 %v1664_v52, 1e-24 }
 0x5e9   : > { %2928 = vrsqrt.f32 %v1665_v56 }
 0x5ea   : > { %2930 = vrsqrt.f32 %v1658_v51 }
 0x5f3   : > { %v2929_v62 = vpop.eup %2928 }
 0x5f4   : > { %v2931_v1 = vpop.eup %2930  ;;  %v1667_v2 = vmul.f32 %v2929_v62, %v1652_v38 }
 0x5f5   : > { %v1660_v9 = vmul.f32 %v2931_v1, %v3966_v30 }
 0x5f6   : > { %2425 = vmatpush3.xpose.msk.msra.mxu0 %vm1196_vm3, %v1667_v2 }
 0x5f9   : > { %2427 = vmatmul.mubr.msk.f32.vlgmr.msra.gmra.mrb[12].mxu0 %vm1196_vm3, %v1660_v9 }
 0x6cc   : > { %v1740_v24 = vpop.f32.mrb[12].mxu0 }
 0x6cd   : > { %v1745_v27 = vmul.f32 %v1744_v19, %v1740_v24  ;;  %v2428_v33 = vpop.f32.mrb[13].mxu0 }
 0x6cf   : > { %1747 = vst.msk [vmem:[%s318_s8] sm:$0xff] %vm1746_vm6, %v1745_v27 }
 0x6d0 PF: > { %s16_s24 = sadd.s32 1, %s2970_s24   ;;  %s4138_s20 = smov %s2962_s22 }
 0x6d1   : > { %p13_p7 = scmp.ge.s32.totalorder %s16_s24, 6   ;;  %s4139_s21 = smov %s2966_s23 }
 0x6d2   : > { %s4140_s22 = smov %s4143_s0  ;;  %s4141_s23 = smov %s4147_s25 }
 0x6d3   :  { %15 = sbr.rel (!%p13_p7) target bundleno = 3 (0x3), region = 81 }

</bundles_post_ra>
